<compile_context>
chip_gen: v7x
topology: tpu7x:2x2x1
jax: 0.10.0
libtpu: 0.0.40
codegen_flags: <defaults>
</compile_context>

<pallas_src>
import math

import jax
import jax.numpy as jnp
from jax.experimental import pallas as pl
from jax.experimental.pallas import tpu as pltpu


# ----------------------------------------------------------------------------
# Small synthetic RoBERTa config (stand-in for roberta-base's 768/12/12)
# ----------------------------------------------------------------------------
VOCAB = 100
TYPE_VOCAB = 2
MAX_POS = 16
HIDDEN = 32
N_HEADS = 4
HEAD_DIM = HIDDEN // N_HEADS
FFN = 64
N_LAYERS = 2
LN_EPS = 1e-5
ATTN_SCALE = 1.0 / math.sqrt(HEAD_DIM)

# Packed per-layer matrix slab: [wqkv | wo | w1 | w2^T], each block 128-lane aligned.
QKV_OFF, WO_OFF, W1_OFF, W2T_OFF = 0, 128, 256, 384
MAT_COLS = 512

# Packed per-layer vector slab rows.
VEC_BQKV, VEC_BO, VEC_B1, VEC_B2, VEC_LN1G, VEC_LN1B, VEC_LN2G, VEC_LN2B = range(8)

# Packed head slab rows: emb LN gamma/beta, pre_classifier W, pre_classifier b, cls W, cls b.
ROW_EMB_G, ROW_EMB_B, ROW_PREW = 0, 1, 2
ROW_PREB = 2 + HIDDEN
ROW_CLSW = 3 + HIDDEN
ROW_CLSB = 4 + HIDDEN
HEAD_ROWS = 5 + HIDDEN


# ----------------------------------------------------------------------------
# In-kernel helpers (pure jnp on VMEM-resident f32 values)
# ----------------------------------------------------------------------------
def _layernorm(x, gamma, beta):
    mu = jnp.mean(x, axis=-1, keepdims=True)
    var = jnp.mean((x - mu) * (x - mu), axis=-1, keepdims=True)
    return (x - mu) * jax.lax.rsqrt(var + LN_EPS) * gamma + beta


def _gelu_tanh(x):
    # TODO(synk): HF roberta-base uses the exact erf GELU; tanh approximation deviates ~1e-3.
    return 0.5 * x * (1.0 + jnp.tanh(0.7978845608028654 * (x + 0.044715 * x * x * x)))


# ----------------------------------------------------------------------------
# Fused whole-forward kernel factory (single invocation, whole batch in sublanes)
# ----------------------------------------------------------------------------
def _make_kernel(B, S):
    BS = B * S
    OUT_ROWS = max(8, ((B + 7) // 8) * 8)

    def kernel(h_ref, mask_ref, mats_ref, vecs_ref, head_ref, o_ref):
        H, nH, dh, F = HIDDEN, N_HEADS, HEAD_DIM, FFN

        x = h_ref[...].astype(jnp.float32)          # (B*S, H) batch folded into sublanes
        mask = mask_ref[...]                        # (nH*B*S, nH*B*S) additive block mask
        hp = head_ref[...]                          # (HEAD_ROWS, H) emb-LN + classifier head

        # embeddings LayerNorm
        x = _layernorm(x, hp[ROW_EMB_G:ROW_EMB_G + 1, :], hp[ROW_EMB_B:ROW_EMB_B + 1, :])

        # ---- transformer encoder layers (post-LN, RoBERTa style), fully unrolled ----
        for l in range(N_LAYERS):
            mats = mats_ref[l].astype(jnp.float32)  # (H, MAT_COLS) bf16 -> f32 once
            vecs = vecs_ref[l]                      # (8, 3H) f32

            w_qkv = mats[:, QKV_OFF:QKV_OFF + 3 * H]
            w_o = mats[:, WO_OFF:WO_OFF + H]
            w_1 = mats[:, W1_OFF:W1_OFF + F]
            w_2t = mats[:, W2T_OFF:W2T_OFF + F]     # (H, F) == w2^T

            b_qkv = vecs[VEC_BQKV:VEC_BQKV + 1, 0:3 * H]
            b_o = vecs[VEC_BO:VEC_BO + 1, 0:H]
            b_1 = vecs[VEC_B1:VEC_B1 + 1, 0:F]
            b_2 = vecs[VEC_B2:VEC_B2 + 1, 0:H]
            ln1g = vecs[VEC_LN1G:VEC_LN1G + 1, 0:H]
            ln1b = vecs[VEC_LN1B:VEC_LN1B + 1, 0:H]
            ln2g = vecs[VEC_LN2G:VEC_LN2G + 1, 0:H]
            ln2b = vecs[VEC_LN2B:VEC_LN2B + 1, 0:H]

            # fused QKV projection: single (BS,H) @ (H,3H) MXU pass
            qkv = jnp.dot(x, w_qkv, preferred_element_type=jnp.float32) + b_qkv

            # stack heads along the sublane axis -> ALL heads' attention is 2 MXU passes;
            # the block-diagonal mask keeps heads (and batch elements) isolated.
            q_st = jnp.concatenate(
                [qkv[:, h0 * dh:(h0 + 1) * dh] for h0 in range(nH)], axis=0)          # (nH*BS, dh)
            k_st = jnp.concatenate(
                [qkv[:, H + h0 * dh:H + (h0 + 1) * dh] for h0 in range(nH)], axis=0)
            v_st = jnp.concatenate(
                [qkv[:, 2 * H + h0 * dh:2 * H + (h0 + 1) * dh] for h0 in range(nH)], axis=0)

            s = jax.lax.dot_general(q_st, k_st, (((1,), (1,)), ((), ())),
                                    preferred_element_type=jnp.float32)               # (nH*BS, nH*BS)
            s = s * ATTN_SCALE + mask
            s = s - jnp.max(s, axis=-1, keepdims=True)
            p = jnp.exp(s)
            p = p * pl.reciprocal(jnp.sum(p, axis=-1, keepdims=True), approx=True)
            ctx = jnp.dot(p, v_st, preferred_element_type=jnp.float32)                # (nH*BS, dh)

            # merge heads back to lanes and apply the output projection as ONE matmul
            merged = jnp.concatenate(
                [ctx[h0 * BS:(h0 + 1) * BS, :] for h0 in range(nH)], axis=1)          # (BS, H)
            attn = jnp.dot(merged, w_o, preferred_element_type=jnp.float32) + b_o

            x = _layernorm(x + attn, ln1g, ln1b)

            f = jnp.dot(x, w_1, preferred_element_type=jnp.float32) + b_1
            f = _gelu_tanh(f)
            f = jax.lax.dot_general(f, w_2t, (((1,), (1,)), ((), ())),
                                    preferred_element_type=jnp.float32) + b_2
            x = _layernorm(x + f, ln2g, ln2b)

        # ---- classifier head on the CLS (position 0) token of every batch element ----
        cls = jnp.concatenate([x[b0 * S:b0 * S + 1, :] for b0 in range(B)], axis=0)   # (B, H)
        pre_w = hp[ROW_PREW:ROW_PREW + HIDDEN, :]
        pooled = jnp.dot(cls, pre_w, preferred_element_type=jnp.float32) \
            + hp[ROW_PREB:ROW_PREB + 1, :]
        pooled = jnp.maximum(pooled, 0.0)                                              # ReLU
        # TODO(synk): Dropout(0.3) is an inference-time identity and is omitted; add a PRNG mask
        #             (pltpu.prng_seed/prng_random_bits) before reusing this kernel for training.
        logit = jnp.sum(pooled * hp[ROW_CLSW:ROW_CLSW + 1, :], axis=-1, keepdims=True) \
            + hp[ROW_CLSB:ROW_CLSB + 1, 0:1]
        prob = 1.0 / (1.0 + jnp.exp(-logit))                                           # (B, 1)

        # single lane-dense padded output slab (one unmasked vst); wrapper slices [:B, 0]
        pad = OUT_ROWS - B
        if pad:
            prob = jnp.concatenate([prob, jnp.zeros((pad, 1), jnp.float32)], axis=0)
        o_ref[...] = jnp.broadcast_to(prob, (OUT_ROWS, 128)).astype(o_ref.dtype)

    return kernel, OUT_ROWS


# ----------------------------------------------------------------------------
# Parameter init (deterministic, synthetic — no checkpoint loading); packed slabs
# ----------------------------------------------------------------------------
def init_params(key):
    def nrm(k, shape, std=0.02):
        return (std * jax.random.normal(k, shape)).astype(jnp.float32)

    keys = iter(jax.random.split(key, 16))
    H, L, F = HIDDEN, N_LAYERS, FFN

    # per-layer matrices packed into one slab, 128-lane-aligned column blocks, stored bf16
    wqkv = nrm(next(keys), (L, H, 3 * H))
    wo = nrm(next(keys), (L, H, H))
    w1 = nrm(next(keys), (L, H, F))
    w2 = nrm(next(keys), (L, F, H))
    mats = jnp.zeros((L, H, MAT_COLS), jnp.float32)
    mats = mats.at[:, :, QKV_OFF:QKV_OFF + 3 * H].set(wqkv)
    mats = mats.at[:, :, WO_OFF:WO_OFF + H].set(wo)
    mats = mats.at[:, :, W1_OFF:W1_OFF + F].set(w1)
    mats = mats.at[:, :, W2T_OFF:W2T_OFF + F].set(jnp.transpose(w2, (0, 2, 1)))

    # per-layer biases + LayerNorm params (biases zero, gamma=1, beta=0)
    vecs = jnp.zeros((L, 8, 3 * H), jnp.float32)
    vecs = vecs.at[:, VEC_LN1G, 0:H].set(1.0)
    vecs = vecs.at[:, VEC_LN2G, 0:H].set(1.0)

    # emb LayerNorm + classifier head (RobertaClass.__init__: Linear(768,768), Linear(768,1))
    head = jnp.zeros((HEAD_ROWS, H), jnp.float32)
    head = head.at[ROW_EMB_G, :].set(1.0)
    head = head.at[ROW_PREW:ROW_PREW + H, :].set(nrm(next(keys), (H, H)))
    head = head.at[ROW_CLSW, :].set(nrm(next(keys), (H,)))

    return {
        "word_emb": nrm(next(keys), (VOCAB, H)),
        "pos_emb": nrm(next(keys), (MAX_POS, H)),
        "type_emb": nrm(next(keys), (TYPE_VOCAB, H)),
        "layer_mats": mats.astype(jnp.bfloat16),   # bf16 weights, f32 accumulation in-kernel
        "layer_vecs": vecs,
        "head_pack": head,
    }


# ----------------------------------------------------------------------------
# Forward pass (mirrors RobertaClass.forward)
# ----------------------------------------------------------------------------
def roberta_class_forward(params, input_ids, attention_mask, token_type_ids):
    B, S = input_ids.shape
    H = HIDDEN
    BS = B * S
    R = N_HEADS * BS

    # ---- embeddings (gathers stay in JAX as glue; everything else is in the kernel) ----
    h = (params["word_emb"][input_ids]
         + params["pos_emb"][jnp.arange(S)][None, :, :]
         + params["type_emb"][token_type_ids]).astype(jnp.float32)           # (B, S, H)
    h2 = h.reshape(BS, H)                                                    # batch -> sublanes

    # additive attention mask for the head/batch-stacked layout:
    # stacked row r = head*B*S + batch*S + token; rows may attend iff same (head, batch)
    # block AND the key position is not padding.  Built once here (no in-kernel broadcasts).
    blk = jnp.arange(R) // S
    same_block = blk[:, None] == blk[None, :]
    key_ok = jnp.tile(attention_mask.reshape(-1) > 0, (N_HEADS,))
    bigmask = jnp.where(same_block & key_ok[None, :], 0.0, -1e9).astype(jnp.float32)   # (R, R)

    kernel, out_rows = _make_kernel(B, S)

    out_padded = pl.pallas_call(
        kernel,
        out_shape=jax.ShapeDtypeStruct((out_rows, 128), jnp.float32),
        grid=(1,),                                  # whole batch in a single grid step
        in_specs=[
            pl.BlockSpec((BS, H), lambda i: (0, 0)),
            pl.BlockSpec((R, R), lambda i: (0, 0)),
            pl.BlockSpec(params["layer_mats"].shape, lambda i: (0, 0, 0)),
            pl.BlockSpec(params["layer_vecs"].shape, lambda i: (0, 0, 0)),
            pl.BlockSpec(params["head_pack"].shape, lambda i: (0, 0)),
        ],
        out_specs=pl.BlockSpec((out_rows, 128), lambda i: (0, 0)),
        compiler_params=pltpu.CompilerParams(dimension_semantics=("arbitrary",)),
    )(h2, bigmask, params["layer_mats"], params["layer_vecs"], params["head_pack"])

    return out_padded[:B, 0]                        # == output.squeeze() -> (B,)


# ----------------------------------------------------------------------------
# Main
# ----------------------------------------------------------------------------
if __name__ == "__main__":
    key = jax.random.PRNGKey(0)
    kp, ki = jax.random.split(key)

    B, S = 2, 8
    params = init_params(kp)
    input_ids = jax.random.randint(ki, (B, S), 0, VOCAB, dtype=jnp.int32)
    attention_mask = jnp.ones((B, S), dtype=jnp.int32)
    token_type_ids = jnp.zeros((B, S), dtype=jnp.int32)

    fwd = jax.jit(roberta_class_forward)
    out = fwd(params, input_ids, attention_mask, token_type_ids)
    out = jax.block_until_ready(out)
    assert out.shape == (B,)
    assert bool(jnp.all(jnp.isfinite(out)))
    assert bool(jnp.all((out >= 0.0) & (out <= 1.0)))
    print("KERNEL_OK")
</pallas_src>

<mosaic_0001>
module attributes {stable_mosaic.version = 11 : i64} {
  func.func @kernel(%arg0: i32, %arg1: memref<16x32xf32, #tpu.memory_space<vmem>>, %arg2: memref<64x64xf32, #tpu.memory_space<vmem>>, %arg3: memref<2x32x512xbf16, #tpu.memory_space<vmem>>, %arg4: memref<2x8x96xf32, #tpu.memory_space<vmem>>, %arg5: memref<37x32xf32, #tpu.memory_space<vmem>>, %arg6: memref<8x128xf32, #tpu.memory_space<vmem>>) attributes {dimension_semantics = [#tpu.dimension_semantics<arbitrary>], iteration_bounds = array<i64: 1>, scalar_prefetch = 0 : i64, scratch_operands = 0 : i64, tpu.core_type = #tpu.core_type<tc>, window_params = [{pipeline_mode = #tpu.pipeline_mode<synchronous>, transform_indices = @transform_0, window_bounds = array<i64: 16, 32>}, {pipeline_mode = #tpu.pipeline_mode<synchronous>, transform_indices = @transform_1, window_bounds = array<i64: 64, 64>}, {pipeline_mode = #tpu.pipeline_mode<synchronous>, transform_indices = @transform_2, window_bounds = array<i64: 2, 32, 512>}, {pipeline_mode = #tpu.pipeline_mode<synchronous>, transform_indices = @transform_3, window_bounds = array<i64: 2, 8, 96>}, {pipeline_mode = #tpu.pipeline_mode<synchronous>, transform_indices = @transform_4, window_bounds = array<i64: 37, 32>}, {pipeline_mode = #tpu.pipeline_mode<synchronous>, transform_indices = @transform_5, window_bounds = array<i64: 8, 128>}]} {
    %c0 = arith.constant 0 : index
    %c0_0 = arith.constant 0 : index
    %0 = vector.load %arg1[%c0, %c0_0] : memref<16x32xf32, #tpu.memory_space<vmem>>, vector<16x32xf32>
    %c0_1 = arith.constant 0 : index
    %c0_2 = arith.constant 0 : index
    %1 = vector.load %arg2[%c0_1, %c0_2] : memref<64x64xf32, #tpu.memory_space<vmem>>, vector<64x64xf32>
    %c0_3 = arith.constant 0 : index
    %c0_4 = arith.constant 0 : index
    %2 = vector.load %arg5[%c0_3, %c0_4] : memref<37x32xf32, #tpu.memory_space<vmem>>, vector<37x32xf32>
    %3 = vector.extract_strided_slice %2 {offsets = [0, 0], sizes = [1, 32], strides = [1, 1]} : vector<37x32xf32> to vector<1x32xf32>
    %4 = vector.extract_strided_slice %2 {offsets = [1, 0], sizes = [1, 32], strides = [1, 1]} : vector<37x32xf32> to vector<1x32xf32>
    %cst = arith.constant dense<0.000000e+00> : vector<16xf32>
    %5 = vector.multi_reduction <add>, %0, %cst [1] : vector<16x32xf32> to vector<16xf32>
    %6 = vector.shape_cast %5 : vector<16xf32> to vector<16x1xf32>
    %cst_5 = arith.constant 3.200000e+01 : f32
    %7 = vector.broadcast %cst_5 : f32 to vector<16x1xf32>
    %8 = arith.divf %6, %7 : vector<16x1xf32>
    %9 = vector.broadcast %8 : vector<16x1xf32> to vector<16x32xf32>
    %10 = arith.subf %0, %9 : vector<16x32xf32>
    %11 = vector.broadcast %8 : vector<16x1xf32> to vector<16x32xf32>
    %12 = arith.subf %0, %11 : vector<16x32xf32>
    %13 = arith.mulf %10, %12 : vector<16x32xf32>
    %cst_6 = arith.constant dense<0.000000e+00> : vector<16xf32>
    %14 = vector.multi_reduction <add>, %13, %cst_6 [1] : vector<16x32xf32> to vector<16xf32>
    %15 = vector.shape_cast %14 : vector<16xf32> to vector<16x1xf32>
    %cst_7 = arith.constant 3.200000e+01 : f32
    %16 = vector.broadcast %cst_7 : f32 to vector<16x1xf32>
    %17 = arith.divf %15, %16 : vector<16x1xf32>
    %18 = vector.broadcast %8 : vector<16x1xf32> to vector<16x32xf32>
    %19 = arith.subf %0, %18 : vector<16x32xf32>
    %cst_8 = arith.constant 9.99999974E-6 : f32
    %20 = vector.broadcast %cst_8 : f32 to vector<16x1xf32>
    %21 = arith.addf %17, %20 : vector<16x1xf32>
    %22 = math.rsqrt %21 : vector<16x1xf32>
    %23 = vector.broadcast %22 : vector<16x1xf32> to vector<16x32xf32>
    %24 = arith.mulf %19, %23 : vector<16x32xf32>
    %25 = vector.broadcast %3 : vector<1x32xf32> to vector<16x32xf32>
    %26 = arith.mulf %24, %25 : vector<16x32xf32>
    %27 = vector.broadcast %4 : vector<1x32xf32> to vector<16x32xf32>
    %28 = arith.addf %26, %27 : vector<16x32xf32>
    %c0_9 = arith.constant 0 : index
    %c0_10 = arith.constant 0 : index
    %c0_11 = arith.constant 0 : index
    %29 = vector.load %arg3[%c0_9, %c0_10, %c0_11] : memref<2x32x512xbf16, #tpu.memory_space<vmem>>, vector<1x32x512xbf16>
    %30 = vector.shape_cast %29 : vector<1x32x512xbf16> to vector<32x512xbf16>
    %31 = arith.extf %30 : vector<32x512xbf16> to vector<32x512xf32>
    %c0_12 = arith.constant 0 : index
    %c0_13 = arith.constant 0 : index
    %c0_14 = arith.constant 0 : index
    %32 = vector.load %arg4[%c0_12, %c0_13, %c0_14] : memref<2x8x96xf32, #tpu.memory_space<vmem>>, vector<1x8x96xf32>
    %33 = vector.shape_cast %32 : vector<1x8x96xf32> to vector<8x96xf32>
    %34 = vector.extract_strided_slice %31 {offsets = [0, 0], sizes = [32, 96], strides = [1, 1]} : vector<32x512xf32> to vector<32x96xf32>
    %35 = vector.extract_strided_slice %31 {offsets = [0, 128], sizes = [32, 32], strides = [1, 1]} : vector<32x512xf32> to vector<32x32xf32>
    %36 = vector.extract_strided_slice %31 {offsets = [0, 256], sizes = [32, 64], strides = [1, 1]} : vector<32x512xf32> to vector<32x64xf32>
    %37 = vector.extract_strided_slice %31 {offsets = [0, 384], sizes = [32, 64], strides = [1, 1]} : vector<32x512xf32> to vector<32x64xf32>
    %38 = vector.extract_strided_slice %33 {offsets = [0, 0], sizes = [1, 96], strides = [1, 1]} : vector<8x96xf32> to vector<1x96xf32>
    %39 = vector.extract_strided_slice %33 {offsets = [1, 0], sizes = [1, 32], strides = [1, 1]} : vector<8x96xf32> to vector<1x32xf32>
    %40 = vector.extract_strided_slice %33 {offsets = [2, 0], sizes = [1, 64], strides = [1, 1]} : vector<8x96xf32> to vector<1x64xf32>
    %41 = vector.extract_strided_slice %33 {offsets = [3, 0], sizes = [1, 32], strides = [1, 1]} : vector<8x96xf32> to vector<1x32xf32>
    %42 = vector.extract_strided_slice %33 {offsets = [4, 0], sizes = [1, 32], strides = [1, 1]} : vector<8x96xf32> to vector<1x32xf32>
    %43 = vector.extract_strided_slice %33 {offsets = [5, 0], sizes = [1, 32], strides = [1, 1]} : vector<8x96xf32> to vector<1x32xf32>
    %44 = vector.extract_strided_slice %33 {offsets = [6, 0], sizes = [1, 32], strides = [1, 1]} : vector<8x96xf32> to vector<1x32xf32>
    %45 = vector.extract_strided_slice %33 {offsets = [7, 0], sizes = [1, 32], strides = [1, 1]} : vector<8x96xf32> to vector<1x32xf32>
    %cst_15 = arith.constant dense<0.000000e+00> : vector<16x96xf32>
    %46 = tpu.matmul %28, %34, %cst_15 {dimension_numbers = #tpu.dot_dimension_numbers<[1], [0], [0], [1], [0, 0, 1, 1], [], []>} : vector<16x32xf32>, vector<32x96xf32>, vector<16x96xf32> -> vector<16x96xf32>
    %47 = vector.broadcast %38 : vector<1x96xf32> to vector<16x96xf32>
    %48 = arith.addf %46, %47 : vector<16x96xf32>
    %49 = vector.extract_strided_slice %48 {offsets = [0, 0], sizes = [16, 8], strides = [1, 1]} : vector<16x96xf32> to vector<16x8xf32>
    %50 = vector.extract_strided_slice %48 {offsets = [0, 8], sizes = [16, 8], strides = [1, 1]} : vector<16x96xf32> to vector<16x8xf32>
    %51 = vector.extract_strided_slice %48 {offsets = [0, 16], sizes = [16, 8], strides = [1, 1]} : vector<16x96xf32> to vector<16x8xf32>
    %52 = vector.extract_strided_slice %48 {offsets = [0, 24], sizes = [16, 8], strides = [1, 1]} : vector<16x96xf32> to vector<16x8xf32>
    %53 = tpu.concatenate %49, %50, %51, %52 in 0 : vector<16x8xf32>, vector<16x8xf32>, vector<16x8xf32>, vector<16x8xf32> -> vector<64x8xf32>
    %54 = vector.extract_strided_slice %48 {offsets = [0, 32], sizes = [16, 8], strides = [1, 1]} : vector<16x96xf32> to vector<16x8xf32>
    %55 = vector.extract_strided_slice %48 {offsets = [0, 40], sizes = [16, 8], strides = [1, 1]} : vector<16x96xf32> to vector<16x8xf32>
    %56 = vector.extract_strided_slice %48 {offsets = [0, 48], sizes = [16, 8], strides = [1, 1]} : vector<16x96xf32> to vector<16x8xf32>
    %57 = vector.extract_strided_slice %48 {offsets = [0, 56], sizes = [16, 8], strides = [1, 1]} : vector<16x96xf32> to vector<16x8xf32>
    %58 = tpu.concatenate %54, %55, %56, %57 in 0 : vector<16x8xf32>, vector<16x8xf32>, vector<16x8xf32>, vector<16x8xf32> -> vector<64x8xf32>
    %59 = vector.extract_strided_slice %48 {offsets = [0, 64], sizes = [16, 8], strides = [1, 1]} : vector<16x96xf32> to vector<16x8xf32>
    %60 = vector.extract_strided_slice %48 {offsets = [0, 72], sizes = [16, 8], strides = [1, 1]} : vector<16x96xf32> to vector<16x8xf32>
    %61 = vector.extract_strided_slice %48 {offsets = [0, 80], sizes = [16, 8], strides = [1, 1]} : vector<16x96xf32> to vector<16x8xf32>
    %62 = vector.extract_strided_slice %48 {offsets = [0, 88], sizes = [16, 8], strides = [1, 1]} : vector<16x96xf32> to vector<16x8xf32>
    %63 = tpu.concatenate %59, %60, %61, %62 in 0 : vector<16x8xf32>, vector<16x8xf32>, vector<16x8xf32>, vector<16x8xf32> -> vector<64x8xf32>
    %cst_16 = arith.constant dense<0.000000e+00> : vector<64x64xf32>
    %64 = tpu.matmul %53, %58, %cst_16 {dimension_numbers = #tpu.dot_dimension_numbers<[1], [1], [0], [0], [0, 0, 1, 0], [], []>} : vector<64x8xf32>, vector<64x8xf32>, vector<64x64xf32> -> vector<64x64xf32>
    %cst_17 = arith.constant 0.353553385 : f32
    %65 = vector.broadcast %cst_17 : f32 to vector<64x64xf32>
    %66 = arith.mulf %64, %65 : vector<64x64xf32>
    %67 = arith.addf %66, %1 : vector<64x64xf32>
    %cst_18 = arith.constant dense<0xFF800000> : vector<64xf32>
    %68 = vector.multi_reduction <maximumf>, %67, %cst_18 [1] : vector<64x64xf32> to vector<64xf32>
    %69 = vector.shape_cast %68 : vector<64xf32> to vector<64x1xf32>
    %70 = vector.broadcast %69 : vector<64x1xf32> to vector<64x64xf32>
    %71 = arith.subf %67, %70 : vector<64x64xf32>
    %72 = math.exp %71 : vector<64x64xf32>
    %cst_19 = arith.constant dense<0.000000e+00> : vector<64xf32>
    %73 = vector.multi_reduction <add>, %72, %cst_19 [1] : vector<64x64xf32> to vector<64xf32>
    %74 = vector.shape_cast %73 : vector<64xf32> to vector<64x1xf32>
    %75 = tpu.reciprocal %74 {approx = true} : vector<64x1xf32> -> vector<64x1xf32>
    %76 = vector.broadcast %75 : vector<64x1xf32> to vector<64x64xf32>
    %77 = arith.mulf %72, %76 : vector<64x64xf32>
    %cst_20 = arith.constant dense<0.000000e+00> : vector<64x8xf32>
    %78 = tpu.matmul %77, %63, %cst_20 {dimension_numbers = #tpu.dot_dimension_numbers<[1], [0], [0], [1], [0, 0, 1, 1], [], []>} : vector<64x64xf32>, vector<64x8xf32>, vector<64x8xf32> -> vector<64x8xf32>
    %79 = vector.extract_strided_slice %78 {offsets = [0, 0], sizes = [16, 8], strides = [1, 1]} : vector<64x8xf32> to vector<16x8xf32>
    %80 = vector.extract_strided_slice %78 {offsets = [16, 0], sizes = [16, 8], strides = [1, 1]} : vector<64x8xf32> to vector<16x8xf32>
    %81 = vector.extract_strided_slice %78 {offsets = [32, 0], sizes = [16, 8], strides = [1, 1]} : vector<64x8xf32> to vector<16x8xf32>
    %82 = vector.extract_strided_slice %78 {offsets = [48, 0], sizes = [16, 8], strides = [1, 1]} : vector<64x8xf32> to vector<16x8xf32>
    %83 = tpu.concatenate %79, %80, %81, %82 in 1 : vector<16x8xf32>, vector<16x8xf32>, vector<16x8xf32>, vector<16x8xf32> -> vector<16x32xf32>
    %cst_21 = arith.constant dense<0.000000e+00> : vector<16x32xf32>
    %84 = tpu.matmul %83, %35, %cst_21 {dimension_numbers = #tpu.dot_dimension_numbers<[1], [0], [0], [1], [0, 0, 1, 1], [], []>} : vector<16x32xf32>, vector<32x32xf32>, vector<16x32xf32> -> vector<16x32xf32>
    %85 = vector.broadcast %39 : vector<1x32xf32> to vector<16x32xf32>
    %86 = arith.addf %84, %85 : vector<16x32xf32>
    %87 = arith.addf %28, %86 : vector<16x32xf32>
    %cst_22 = arith.constant dense<0.000000e+00> : vector<16xf32>
    %88 = vector.multi_reduction <add>, %87, %cst_22 [1] : vector<16x32xf32> to vector<16xf32>
    %89 = vector.shape_cast %88 : vector<16xf32> to vector<16x1xf32>
    %cst_23 = arith.constant 3.200000e+01 : f32
    %90 = vector.broadcast %cst_23 : f32 to vector<16x1xf32>
    %91 = arith.divf %89, %90 : vector<16x1xf32>
    %92 = vector.broadcast %91 : vector<16x1xf32> to vector<16x32xf32>
    %93 = arith.subf %87, %92 : vector<16x32xf32>
    %94 = vector.broadcast %91 : vector<16x1xf32> to vector<16x32xf32>
    %95 = arith.subf %87, %94 : vector<16x32xf32>
    %96 = arith.mulf %93, %95 : vector<16x32xf32>
    %cst_24 = arith.constant dense<0.000000e+00> : vector<16xf32>
    %97 = vector.multi_reduction <add>, %96, %cst_24 [1] : vector<16x32xf32> to vector<16xf32>
    %98 = vector.shape_cast %97 : vector<16xf32> to vector<16x1xf32>
    %cst_25 = arith.constant 3.200000e+01 : f32
    %99 = vector.broadcast %cst_25 : f32 to vector<16x1xf32>
    %100 = arith.divf %98, %99 : vector<16x1xf32>
    %101 = vector.broadcast %91 : vector<16x1xf32> to vector<16x32xf32>
    %102 = arith.subf %87, %101 : vector<16x32xf32>
    %cst_26 = arith.constant 9.99999974E-6 : f32
    %103 = vector.broadcast %cst_26 : f32 to vector<16x1xf32>
    %104 = arith.addf %100, %103 : vector<16x1xf32>
    %105 = math.rsqrt %104 : vector<16x1xf32>
    %106 = vector.broadcast %105 : vector<16x1xf32> to vector<16x32xf32>
    %107 = arith.mulf %102, %106 : vector<16x32xf32>
    %108 = vector.broadcast %42 : vector<1x32xf32> to vector<16x32xf32>
    %109 = arith.mulf %107, %108 : vector<16x32xf32>
    %110 = vector.broadcast %43 : vector<1x32xf32> to vector<16x32xf32>
    %111 = arith.addf %109, %110 : vector<16x32xf32>
    %cst_27 = arith.constant dense<0.000000e+00> : vector<16x64xf32>
    %112 = tpu.matmul %111, %36, %cst_27 {dimension_numbers = #tpu.dot_dimension_numbers<[1], [0], [0], [1], [0, 0, 1, 1], [], []>} : vector<16x32xf32>, vector<32x64xf32>, vector<16x64xf32> -> vector<16x64xf32>
    %113 = vector.broadcast %40 : vector<1x64xf32> to vector<16x64xf32>
    %114 = arith.addf %112, %113 : vector<16x64xf32>
    %cst_28 = arith.constant 5.000000e-01 : f32
    %115 = vector.broadcast %cst_28 : f32 to vector<16x64xf32>
    %116 = arith.mulf %115, %114 : vector<16x64xf32>
    %cst_29 = arith.constant 4.471500e-02 : f32
    %117 = vector.broadcast %cst_29 : f32 to vector<16x64xf32>
    %118 = arith.mulf %117, %114 : vector<16x64xf32>
    %119 = arith.mulf %118, %114 : vector<16x64xf32>
    %120 = arith.mulf %119, %114 : vector<16x64xf32>
    %121 = arith.addf %114, %120 : vector<16x64xf32>
    %cst_30 = arith.constant 0.797884583 : f32
    %122 = vector.broadcast %cst_30 : f32 to vector<16x64xf32>
    %123 = arith.mulf %122, %121 : vector<16x64xf32>
    %124 = math.tanh %123 : vector<16x64xf32>
    %cst_31 = arith.constant 1.000000e+00 : f32
    %125 = vector.broadcast %cst_31 : f32 to vector<16x64xf32>
    %126 = arith.addf %125, %124 : vector<16x64xf32>
    %127 = arith.mulf %116, %126 : vector<16x64xf32>
    %cst_32 = arith.constant dense<0.000000e+00> : vector<16x32xf32>
    %128 = tpu.matmul %127, %37, %cst_32 {dimension_numbers = #tpu.dot_dimension_numbers<[1], [1], [0], [0], [0, 0, 1, 0], [], []>} : vector<16x64xf32>, vector<32x64xf32>, vector<16x32xf32> -> vector<16x32xf32>
    %129 = vector.broadcast %41 : vector<1x32xf32> to vector<16x32xf32>
    %130 = arith.addf %128, %129 : vector<16x32xf32>
    %131 = arith.addf %111, %130 : vector<16x32xf32>
    %cst_33 = arith.constant dense<0.000000e+00> : vector<16xf32>
    %132 = vector.multi_reduction <add>, %131, %cst_33 [1] : vector<16x32xf32> to vector<16xf32>
    %133 = vector.shape_cast %132 : vector<16xf32> to vector<16x1xf32>
    %cst_34 = arith.constant 3.200000e+01 : f32
    %134 = vector.broadcast %cst_34 : f32 to vector<16x1xf32>
    %135 = arith.divf %133, %134 : vector<16x1xf32>
    %136 = vector.broadcast %135 : vector<16x1xf32> to vector<16x32xf32>
    %137 = arith.subf %131, %136 : vector<16x32xf32>
    %138 = vector.broadcast %135 : vector<16x1xf32> to vector<16x32xf32>
    %139 = arith.subf %131, %138 : vector<16x32xf32>
    %140 = arith.mulf %137, %139 : vector<16x32xf32>
    %cst_35 = arith.constant dense<0.000000e+00> : vector<16xf32>
    %141 = vector.multi_reduction <add>, %140, %cst_35 [1] : vector<16x32xf32> to vector<16xf32>
    %142 = vector.shape_cast %141 : vector<16xf32> to vector<16x1xf32>
    %cst_36 = arith.constant 3.200000e+01 : f32
    %143 = vector.broadcast %cst_36 : f32 to vector<16x1xf32>
    %144 = arith.divf %142, %143 : vector<16x1xf32>
    %145 = vector.broadcast %135 : vector<16x1xf32> to vector<16x32xf32>
    %146 = arith.subf %131, %145 : vector<16x32xf32>
    %cst_37 = arith.constant 9.99999974E-6 : f32
    %147 = vector.broadcast %cst_37 : f32 to vector<16x1xf32>
    %148 = arith.addf %144, %147 : vector<16x1xf32>
    %149 = math.rsqrt %148 : vector<16x1xf32>
    %150 = vector.broadcast %149 : vector<16x1xf32> to vector<16x32xf32>
    %151 = arith.mulf %146, %150 : vector<16x32xf32>
    %152 = vector.broadcast %44 : vector<1x32xf32> to vector<16x32xf32>
    %153 = arith.mulf %151, %152 : vector<16x32xf32>
    %154 = vector.broadcast %45 : vector<1x32xf32> to vector<16x32xf32>
    %155 = arith.addf %153, %154 : vector<16x32xf32>
    %c1 = arith.constant 1 : index
    %c0_38 = arith.constant 0 : index
    %c0_39 = arith.constant 0 : index
    %156 = vector.load %arg3[%c1, %c0_38, %c0_39] : memref<2x32x512xbf16, #tpu.memory_space<vmem>>, vector<1x32x512xbf16>
    %157 = vector.shape_cast %156 : vector<1x32x512xbf16> to vector<32x512xbf16>
    %158 = arith.extf %157 : vector<32x512xbf16> to vector<32x512xf32>
    %c1_40 = arith.constant 1 : index
    %c0_41 = arith.constant 0 : index
    %c0_42 = arith.constant 0 : index
    %159 = vector.load %arg4[%c1_40, %c0_41, %c0_42] : memref<2x8x96xf32, #tpu.memory_space<vmem>>, vector<1x8x96xf32>
    %160 = vector.shape_cast %159 : vector<1x8x96xf32> to vector<8x96xf32>
    %161 = vector.extract_strided_slice %158 {offsets = [0, 0], sizes = [32, 96], strides = [1, 1]} : vector<32x512xf32> to vector<32x96xf32>
    %162 = vector.extract_strided_slice %158 {offsets = [0, 128], sizes = [32, 32], strides = [1, 1]} : vector<32x512xf32> to vector<32x32xf32>
    %163 = vector.extract_strided_slice %158 {offsets = [0, 256], sizes = [32, 64], strides = [1, 1]} : vector<32x512xf32> to vector<32x64xf32>
    %164 = vector.extract_strided_slice %158 {offsets = [0, 384], sizes = [32, 64], strides = [1, 1]} : vector<32x512xf32> to vector<32x64xf32>
    %165 = vector.extract_strided_slice %160 {offsets = [0, 0], sizes = [1, 96], strides = [1, 1]} : vector<8x96xf32> to vector<1x96xf32>
    %166 = vector.extract_strided_slice %160 {offsets = [1, 0], sizes = [1, 32], strides = [1, 1]} : vector<8x96xf32> to vector<1x32xf32>
    %167 = vector.extract_strided_slice %160 {offsets = [2, 0], sizes = [1, 64], strides = [1, 1]} : vector<8x96xf32> to vector<1x64xf32>
    %168 = vector.extract_strided_slice %160 {offsets = [3, 0], sizes = [1, 32], strides = [1, 1]} : vector<8x96xf32> to vector<1x32xf32>
    %169 = vector.extract_strided_slice %160 {offsets = [4, 0], sizes = [1, 32], strides = [1, 1]} : vector<8x96xf32> to vector<1x32xf32>
    %170 = vector.extract_strided_slice %160 {offsets = [5, 0], sizes = [1, 32], strides = [1, 1]} : vector<8x96xf32> to vector<1x32xf32>
    %171 = vector.extract_strided_slice %160 {offsets = [6, 0], sizes = [1, 32], strides = [1, 1]} : vector<8x96xf32> to vector<1x32xf32>
    %172 = vector.extract_strided_slice %160 {offsets = [7, 0], sizes = [1, 32], strides = [1, 1]} : vector<8x96xf32> to vector<1x32xf32>
    %cst_43 = arith.constant dense<0.000000e+00> : vector<16x96xf32>
    %173 = tpu.matmul %155, %161, %cst_43 {dimension_numbers = #tpu.dot_dimension_numbers<[1], [0], [0], [1], [0, 0, 1, 1], [], []>} : vector<16x32xf32>, vector<32x96xf32>, vector<16x96xf32> -> vector<16x96xf32>
    %174 = vector.broadcast %165 : vector<1x96xf32> to vector<16x96xf32>
    %175 = arith.addf %173, %174 : vector<16x96xf32>
    %176 = vector.extract_strided_slice %175 {offsets = [0, 0], sizes = [16, 8], strides = [1, 1]} : vector<16x96xf32> to vector<16x8xf32>
    %177 = vector.extract_strided_slice %175 {offsets = [0, 8], sizes = [16, 8], strides = [1, 1]} : vector<16x96xf32> to vector<16x8xf32>
    %178 = vector.extract_strided_slice %175 {offsets = [0, 16], sizes = [16, 8], strides = [1, 1]} : vector<16x96xf32> to vector<16x8xf32>
    %179 = vector.extract_strided_slice %175 {offsets = [0, 24], sizes = [16, 8], strides = [1, 1]} : vector<16x96xf32> to vector<16x8xf32>
    %180 = tpu.concatenate %176, %177, %178, %179 in 0 : vector<16x8xf32>, vector<16x8xf32>, vector<16x8xf32>, vector<16x8xf32> -> vector<64x8xf32>
    %181 = vector.extract_strided_slice %175 {offsets = [0, 32], sizes = [16, 8], strides = [1, 1]} : vector<16x96xf32> to vector<16x8xf32>
    %182 = vector.extract_strided_slice %175 {offsets = [0, 40], sizes = [16, 8], strides = [1, 1]} : vector<16x96xf32> to vector<16x8xf32>
    %183 = vector.extract_strided_slice %175 {offsets = [0, 48], sizes = [16, 8], strides = [1, 1]} : vector<16x96xf32> to vector<16x8xf32>
    %184 = vector.extract_strided_slice %175 {offsets = [0, 56], sizes = [16, 8], strides = [1, 1]} : vector<16x96xf32> to vector<16x8xf32>
    %185 = tpu.concatenate %181, %182, %183, %184 in 0 : vector<16x8xf32>, vector<16x8xf32>, vector<16x8xf32>, vector<16x8xf32> -> vector<64x8xf32>
    %186 = vector.extract_strided_slice %175 {offsets = [0, 64], sizes = [16, 8], strides = [1, 1]} : vector<16x96xf32> to vector<16x8xf32>
    %187 = vector.extract_strided_slice %175 {offsets = [0, 72], sizes = [16, 8], strides = [1, 1]} : vector<16x96xf32> to vector<16x8xf32>
    %188 = vector.extract_strided_slice %175 {offsets = [0, 80], sizes = [16, 8], strides = [1, 1]} : vector<16x96xf32> to vector<16x8xf32>
    %189 = vector.extract_strided_slice %175 {offsets = [0, 88], sizes = [16, 8], strides = [1, 1]} : vector<16x96xf32> to vector<16x8xf32>
    %190 = tpu.concatenate %186, %187, %188, %189 in 0 : vector<16x8xf32>, vector<16x8xf32>, vector<16x8xf32>, vector<16x8xf32> -> vector<64x8xf32>
    %cst_44 = arith.constant dense<0.000000e+00> : vector<64x64xf32>
    %191 = tpu.matmul %180, %185, %cst_44 {dimension_numbers = #tpu.dot_dimension_numbers<[1], [1], [0], [0], [0, 0, 1, 0], [], []>} : vector<64x8xf32>, vector<64x8xf32>, vector<64x64xf32> -> vector<64x64xf32>
    %cst_45 = arith.constant 0.353553385 : f32
    %192 = vector.broadcast %cst_45 : f32 to vector<64x64xf32>
    %193 = arith.mulf %191, %192 : vector<64x64xf32>
    %194 = arith.addf %193, %1 : vector<64x64xf32>
    %cst_46 = arith.constant dense<0xFF800000> : vector<64xf32>
    %195 = vector.multi_reduction <maximumf>, %194, %cst_46 [1] : vector<64x64xf32> to vector<64xf32>
    %196 = vector.shape_cast %195 : vector<64xf32> to vector<64x1xf32>
    %197 = vector.broadcast %196 : vector<64x1xf32> to vector<64x64xf32>
    %198 = arith.subf %194, %197 : vector<64x64xf32>
    %199 = math.exp %198 : vector<64x64xf32>
    %cst_47 = arith.constant dense<0.000000e+00> : vector<64xf32>
    %200 = vector.multi_reduction <add>, %199, %cst_47 [1] : vector<64x64xf32> to vector<64xf32>
    %201 = vector.shape_cast %200 : vector<64xf32> to vector<64x1xf32>
    %202 = tpu.reciprocal %201 {approx = true} : vector<64x1xf32> -> vector<64x1xf32>
    %203 = vector.broadcast %202 : vector<64x1xf32> to vector<64x64xf32>
    %204 = arith.mulf %199, %203 : vector<64x64xf32>
    %cst_48 = arith.constant dense<0.000000e+00> : vector<64x8xf32>
    %205 = tpu.matmul %204, %190, %cst_48 {dimension_numbers = #tpu.dot_dimension_numbers<[1], [0], [0], [1], [0, 0, 1, 1], [], []>} : vector<64x64xf32>, vector<64x8xf32>, vector<64x8xf32> -> vector<64x8xf32>
    %206 = vector.extract_strided_slice %205 {offsets = [0, 0], sizes = [16, 8], strides = [1, 1]} : vector<64x8xf32> to vector<16x8xf32>
    %207 = vector.extract_strided_slice %205 {offsets = [16, 0], sizes = [16, 8], strides = [1, 1]} : vector<64x8xf32> to vector<16x8xf32>
    %208 = vector.extract_strided_slice %205 {offsets = [32, 0], sizes = [16, 8], strides = [1, 1]} : vector<64x8xf32> to vector<16x8xf32>
    %209 = vector.extract_strided_slice %205 {offsets = [48, 0], sizes = [16, 8], strides = [1, 1]} : vector<64x8xf32> to vector<16x8xf32>
    %210 = tpu.concatenate %206, %207, %208, %209 in 1 : vector<16x8xf32>, vector<16x8xf32>, vector<16x8xf32>, vector<16x8xf32> -> vector<16x32xf32>
    %cst_49 = arith.constant dense<0.000000e+00> : vector<16x32xf32>
    %211 = tpu.matmul %210, %162, %cst_49 {dimension_numbers = #tpu.dot_dimension_numbers<[1], [0], [0], [1], [0, 0, 1, 1], [], []>} : vector<16x32xf32>, vector<32x32xf32>, vector<16x32xf32> -> vector<16x32xf32>
    %212 = vector.broadcast %166 : vector<1x32xf32> to vector<16x32xf32>
    %213 = arith.addf %211, %212 : vector<16x32xf32>
    %214 = arith.addf %155, %213 : vector<16x32xf32>
    %cst_50 = arith.constant dense<0.000000e+00> : vector<16xf32>
    %215 = vector.multi_reduction <add>, %214, %cst_50 [1] : vector<16x32xf32> to vector<16xf32>
    %216 = vector.shape_cast %215 : vector<16xf32> to vector<16x1xf32>
    %cst_51 = arith.constant 3.200000e+01 : f32
    %217 = vector.broadcast %cst_51 : f32 to vector<16x1xf32>
    %218 = arith.divf %216, %217 : vector<16x1xf32>
    %219 = vector.broadcast %218 : vector<16x1xf32> to vector<16x32xf32>
    %220 = arith.subf %214, %219 : vector<16x32xf32>
    %221 = vector.broadcast %218 : vector<16x1xf32> to vector<16x32xf32>
    %222 = arith.subf %214, %221 : vector<16x32xf32>
    %223 = arith.mulf %220, %222 : vector<16x32xf32>
    %cst_52 = arith.constant dense<0.000000e+00> : vector<16xf32>
    %224 = vector.multi_reduction <add>, %223, %cst_52 [1] : vector<16x32xf32> to vector<16xf32>
    %225 = vector.shape_cast %224 : vector<16xf32> to vector<16x1xf32>
    %cst_53 = arith.constant 3.200000e+01 : f32
    %226 = vector.broadcast %cst_53 : f32 to vector<16x1xf32>
    %227 = arith.divf %225, %226 : vector<16x1xf32>
    %228 = vector.broadcast %218 : vector<16x1xf32> to vector<16x32xf32>
    %229 = arith.subf %214, %228 : vector<16x32xf32>
    %cst_54 = arith.constant 9.99999974E-6 : f32
    %230 = vector.broadcast %cst_54 : f32 to vector<16x1xf32>
    %231 = arith.addf %227, %230 : vector<16x1xf32>
    %232 = math.rsqrt %231 : vector<16x1xf32>
    %233 = vector.broadcast %232 : vector<16x1xf32> to vector<16x32xf32>
    %234 = arith.mulf %229, %233 : vector<16x32xf32>
    %235 = vector.broadcast %169 : vector<1x32xf32> to vector<16x32xf32>
    %236 = arith.mulf %234, %235 : vector<16x32xf32>
    %237 = vector.broadcast %170 : vector<1x32xf32> to vector<16x32xf32>
    %238 = arith.addf %236, %237 : vector<16x32xf32>
    %cst_55 = arith.constant dense<0.000000e+00> : vector<16x64xf32>
    %239 = tpu.matmul %238, %163, %cst_55 {dimension_numbers = #tpu.dot_dimension_numbers<[1], [0], [0], [1], [0, 0, 1, 1], [], []>} : vector<16x32xf32>, vector<32x64xf32>, vector<16x64xf32> -> vector<16x64xf32>
    %240 = vector.broadcast %167 : vector<1x64xf32> to vector<16x64xf32>
    %241 = arith.addf %239, %240 : vector<16x64xf32>
    %cst_56 = arith.constant 5.000000e-01 : f32
    %242 = vector.broadcast %cst_56 : f32 to vector<16x64xf32>
    %243 = arith.mulf %242, %241 : vector<16x64xf32>
    %cst_57 = arith.constant 4.471500e-02 : f32
    %244 = vector.broadcast %cst_57 : f32 to vector<16x64xf32>
    %245 = arith.mulf %244, %241 : vector<16x64xf32>
    %246 = arith.mulf %245, %241 : vector<16x64xf32>
    %247 = arith.mulf %246, %241 : vector<16x64xf32>
    %248 = arith.addf %241, %247 : vector<16x64xf32>
    %cst_58 = arith.constant 0.797884583 : f32
    %249 = vector.broadcast %cst_58 : f32 to vector<16x64xf32>
    %250 = arith.mulf %249, %248 : vector<16x64xf32>
    %251 = math.tanh %250 : vector<16x64xf32>
    %cst_59 = arith.constant 1.000000e+00 : f32
    %252 = vector.broadcast %cst_59 : f32 to vector<16x64xf32>
    %253 = arith.addf %252, %251 : vector<16x64xf32>
    %254 = arith.mulf %243, %253 : vector<16x64xf32>
    %cst_60 = arith.constant dense<0.000000e+00> : vector<16x32xf32>
    %255 = tpu.matmul %254, %164, %cst_60 {dimension_numbers = #tpu.dot_dimension_numbers<[1], [1], [0], [0], [0, 0, 1, 0], [], []>} : vector<16x64xf32>, vector<32x64xf32>, vector<16x32xf32> -> vector<16x32xf32>
    %256 = vector.broadcast %168 : vector<1x32xf32> to vector<16x32xf32>
    %257 = arith.addf %255, %256 : vector<16x32xf32>
    %258 = arith.addf %238, %257 : vector<16x32xf32>
    %cst_61 = arith.constant dense<0.000000e+00> : vector<16xf32>
    %259 = vector.multi_reduction <add>, %258, %cst_61 [1] : vector<16x32xf32> to vector<16xf32>
    %260 = vector.shape_cast %259 : vector<16xf32> to vector<16x1xf32>
    %cst_62 = arith.constant 3.200000e+01 : f32
    %261 = vector.broadcast %cst_62 : f32 to vector<16x1xf32>
    %262 = arith.divf %260, %261 : vector<16x1xf32>
    %263 = vector.broadcast %262 : vector<16x1xf32> to vector<16x32xf32>
    %264 = arith.subf %258, %263 : vector<16x32xf32>
    %265 = vector.broadcast %262 : vector<16x1xf32> to vector<16x32xf32>
    %266 = arith.subf %258, %265 : vector<16x32xf32>
    %267 = arith.mulf %264, %266 : vector<16x32xf32>
    %cst_63 = arith.constant dense<0.000000e+00> : vector<16xf32>
    %268 = vector.multi_reduction <add>, %267, %cst_63 [1] : vector<16x32xf32> to vector<16xf32>
    %269 = vector.shape_cast %268 : vector<16xf32> to vector<16x1xf32>
    %cst_64 = arith.constant 3.200000e+01 : f32
    %270 = vector.broadcast %cst_64 : f32 to vector<16x1xf32>
    %271 = arith.divf %269, %270 : vector<16x1xf32>
    %272 = vector.broadcast %262 : vector<16x1xf32> to vector<16x32xf32>
    %273 = arith.subf %258, %272 : vector<16x32xf32>
    %cst_65 = arith.constant 9.99999974E-6 : f32
    %274 = vector.broadcast %cst_65 : f32 to vector<16x1xf32>
    %275 = arith.addf %271, %274 : vector<16x1xf32>
    %276 = math.rsqrt %275 : vector<16x1xf32>
    %277 = vector.broadcast %276 : vector<16x1xf32> to vector<16x32xf32>
    %278 = arith.mulf %273, %277 : vector<16x32xf32>
    %279 = vector.broadcast %171 : vector<1x32xf32> to vector<16x32xf32>
    %280 = arith.mulf %278, %279 : vector<16x32xf32>
    %281 = vector.broadcast %172 : vector<1x32xf32> to vector<16x32xf32>
    %282 = arith.addf %280, %281 : vector<16x32xf32>
    %283 = vector.extract_strided_slice %282 {offsets = [0, 0], sizes = [1, 32], strides = [1, 1]} : vector<16x32xf32> to vector<1x32xf32>
    %284 = vector.extract_strided_slice %282 {offsets = [8, 0], sizes = [1, 32], strides = [1, 1]} : vector<16x32xf32> to vector<1x32xf32>
    %285 = tpu.concatenate %283, %284 in 0 : vector<1x32xf32>, vector<1x32xf32> -> vector<2x32xf32>
    %286 = vector.extract_strided_slice %2 {offsets = [2, 0], sizes = [32, 32], strides = [1, 1]} : vector<37x32xf32> to vector<32x32xf32>
    %cst_66 = arith.constant dense<0.000000e+00> : vector<2x32xf32>
    %287 = tpu.matmul %285, %286, %cst_66 {dimension_numbers = #tpu.dot_dimension_numbers<[1], [0], [0], [1], [0, 0, 1, 1], [], []>} : vector<2x32xf32>, vector<32x32xf32>, vector<2x32xf32> -> vector<2x32xf32>
    %288 = vector.extract_strided_slice %2 {offsets = [34, 0], sizes = [1, 32], strides = [1, 1]} : vector<37x32xf32> to vector<1x32xf32>
    %289 = vector.broadcast %288 : vector<1x32xf32> to vector<2x32xf32>
    %290 = arith.addf %287, %289 : vector<2x32xf32>
    %cst_67 = arith.constant 0.000000e+00 : f32
    %291 = vector.broadcast %cst_67 : f32 to vector<2x32xf32>
    %292 = arith.maximumf %290, %291 : vector<2x32xf32>
    %293 = vector.extract_strided_slice %2 {offsets = [35, 0], sizes = [1, 32], strides = [1, 1]} : vector<37x32xf32> to vector<1x32xf32>
    %294 = vector.broadcast %293 : vector<1x32xf32> to vector<2x32xf32>
    %295 = arith.mulf %292, %294 : vector<2x32xf32>
    %cst_68 = arith.constant dense<0.000000e+00> : vector<2xf32>
    %296 = vector.multi_reduction <add>, %295, %cst_68 [1] : vector<2x32xf32> to vector<2xf32>
    %297 = vector.shape_cast %296 : vector<2xf32> to vector<2x1xf32>
    %298 = vector.extract_strided_slice %2 {offsets = [36, 0], sizes = [1, 1], strides = [1, 1]} : vector<37x32xf32> to vector<1x1xf32>
    %299 = vector.broadcast %298 : vector<1x1xf32> to vector<2x1xf32>
    %300 = arith.addf %297, %299 : vector<2x1xf32>
    %cst_69 = arith.constant 0.000000e+00 : f32
    %301 = vector.broadcast %cst_69 : f32 to vector<2x1xf32>
    %302 = arith.subf %301, %300 : vector<2x1xf32>
    %303 = math.exp %302 : vector<2x1xf32>
    %cst_70 = arith.constant 1.000000e+00 : f32
    %304 = vector.broadcast %cst_70 : f32 to vector<2x1xf32>
    %305 = arith.addf %304, %303 : vector<2x1xf32>
    %cst_71 = arith.constant 1.000000e+00 : f32
    %306 = vector.broadcast %cst_71 : f32 to vector<2x1xf32>
    %307 = arith.divf %306, %305 : vector<2x1xf32>
    %cst_72 = arith.constant 0.000000e+00 : f32
    %308 = vector.broadcast %cst_72 : f32 to vector<6x1xf32>
    %309 = tpu.concatenate %307, %308 in 0 : vector<2x1xf32>, vector<6x1xf32> -> vector<8x1xf32>
    %310 = vector.shape_cast %309 : vector<8x1xf32> to vector<8x1xf32>
    %311 = vector.broadcast %310 : vector<8x1xf32> to vector<8x128xf32>
    %c0_73 = arith.constant 0 : index
    %c0_74 = arith.constant 0 : index
    %312 = vector.load %arg6[%c0_73, %c0_74] : memref<8x128xf32, #tpu.memory_space<vmem>>, vector<8x128xf32>
    tpu.vector_store %arg6[%c0_73, %c0_74], %311 {strides = array<i32>} : memref<8x128xf32, #tpu.memory_space<vmem>>, vector<8x128xf32>,
    return
  }
  func.func @transform_0(%arg0: i32) -> (i32, i32) {
    %c0_i32 = arith.constant 0 : i32
    %c0_i32_0 = arith.constant 0 : i32
    %c0_i32_1 = arith.constant 0 : i32
    return %c0_i32, %c0_i32_0 : i32, i32
  }
  func.func @transform_1(%arg0: i32) -> (i32, i32) {
    %c0_i32 = arith.constant 0 : i32
    %c0_i32_0 = arith.constant 0 : i32
    %c0_i32_1 = arith.constant 0 : i32
    return %c0_i32, %c0_i32_0 : i32, i32
  }
  func.func @transform_2(%arg0: i32) -> (i32, i32, i32) {
    %c0_i32 = arith.constant 0 : i32
    %c0_i32_0 = arith.constant 0 : i32
    %c0_i32_1 = arith.constant 0 : i32
    %c0_i32_2 = arith.constant 0 : i32
    return %c0_i32, %c0_i32_0, %c0_i32_1 : i32, i32, i32
  }
  func.func @transform_3(%arg0: i32) -> (i32, i32, i32) {
    %c0_i32 = arith.constant 0 : i32
    %c0_i32_0 = arith.constant 0 : i32
    %c0_i32_1 = arith.constant 0 : i32
    %c0_i32_2 = arith.constant 0 : i32
    return %c0_i32, %c0_i32_0, %c0_i32_1 : i32, i32, i32
  }
  func.func @transform_4(%arg0: i32) -> (i32, i32) {
    %c0_i32 = arith.constant 0 : i32
    %c0_i32_0 = arith.constant 0 : i32
    %c0_i32_1 = arith.constant 0 : i32
    return %c0_i32, %c0_i32_0 : i32, i32
  }
  func.func @transform_5(%arg0: i32) -> (i32, i32) {
    %c0_i32 = arith.constant 0 : i32
    %c0_i32_0 = arith.constant 0 : i32
    %c0_i32_1 = arith.constant 0 : i32
    return %c0_i32, %c0_i32_0 : i32, i32
  }
}

</mosaic_0001>

<bundles_post_ra>
// kernel: tile.8
= control target key start
LH: loop header
LB: loop body
LE: loop exit
PB: predicated region body
PF: predicated region fallthrough
CT: control target
= control target key end

     0   :  { %v13_v2 = vmov 0   ;;  %s30_s0 = inlined_call_operand.vmem [shape: pred[16], index: 0, kind: input, shape index: {}]   ;;  %s31_s1 = inlined_call_operand.vmem [shape: pred[4,16], index: 1, kind: output, shape index: {}]  }
   0x1   :  { %v4_v0 = vld [vmem:[%s30_s0] ss:$0 sm:$0xff] }
   0x2   :  { %v7_v1 = vand.u32 255, %v4_v0 }
   0x4   :  { %v8_v3 = vpack.c.b16 %v13_v2, %v7_v1 }
   0x6   :  { %v9_v4 = vpack.c.b8 %v13_v2, %v8_v3 }
   0x8   :  { %11 = vst [vmem:[%s31_s1] sm:$0x1] %v9_v4 }

// kernel: roberta_class_forward.1
= control target key start
LH: loop header
LB: loop body
LE: loop exit
PB: predicated region body
PF: predicated region fallthrough
CT: control target
= control target key end

     0   :  { %vm35_vm0 = vcmask 261120   ;;  %v63_v18 = vlaneseq  ;;  %vm215_vm1 = vcmask 64512   ;;  %s2888_s29 = smov 120   ;;  %s2889_s30 = smov 112   ;;  %vm369_vm3 = vcmask 523264   ;;  %s3431_s0 = inlined_call_operand.vmem [shape: f32[16,32], index: 0, kind: input, shape index: {}]   ;;  %s3432_s2 = inlined_call_operand.vmem [shape: bf16[2,32,512], index: 2, kind: input, shape index: {}]   ;;  %s3433_s4 = inlined_call_operand.vmem [shape: f32[37,32], index: 4, kind: input, shape index: {}]   ;;  %s3434_s3 = inlined_call_operand.vmem [shape: f32[2,8,96], index: 3, kind: input, shape index: {}]   ;;  %s3435_s1 = inlined_call_operand.vmem [shape: f32[64,64], index: 1, kind: input, shape index: {}]   ;;  %s3436_s5 = inlined_call_operand.vmem [shape: f32[8,128], index: 5, kind: output, shape index: {}]  }
   0x1   :  { %v20_v0 = vld [vmem:[%s3431_s0] sm:$0xff]  ;;  %v21_v1 = vld [vmem:[%s3431_s0 + $0x8] sm:$0xff]  ;;  %s2890_s6 = smov 104   ;;  %s2891_s7 = smov 96   ;;  %vm2995_vm2 = vmpackc.low %vm215_vm1, %vm215_vm1  ;;  %vm637_vm4 = vcmask 130048   ;;  %vm640_vm5 = vcmask 195584  }
   0x2   :  { %v36_v2 = vsel %vm35_vm0, %v20_v0, 0.0  ;;  %v39_v3 = vsel %vm35_vm0, %v21_v1, 0.0  ;;  %v2767_v14 = vld [vmem:[%s3432_s2] ss:$16 sps:$4 sm:$0xff]   ;;  %v2946_v22 = vshrl.u32 %v63_v18, 7  ;;  %s2892_s23 = smov 64   ;;  %vm3175_vm6 = vmpackc.low %vm369_vm3, %vm369_vm3 }
   0x3   :  { %37 = vadd.xlane.f32.xlu0 %v36_v2  ;;  %2484 = vmatprep.subr.bf16.mxu0 %v2767_v14  ;;  %v2770_v15 = vld [vmem:[%s3432_s2 + $0x20] ss:$16 sps:$4 sm:$0xff]   ;;  %s2893_s27 = smov 8   ;;  %s2894_s28 = smov 16   ;;  %vm1953_vm7 = vcmask 1045504   ;;  %vm2897_vm8 = vmmov 0  }
   0x4   :  { %2486 = vmatpush3.bf16.msra.mxu0 %v2767_v14  ;;  %v2949_v24 = vsub.s32 0, %v2946_v22  ;;  %v30_v25 = vld [vmem:[%s3433_s4] sm:$0xff]  ;;  %v2955_v26 = vsub.s32 1, %v2946_v22  ;;  %s2895_s8 = smov 24   ;;  %vm1942_vm9 = vcmask 1040384   ;;  %vm2046_vm10 = vcmask 254976  }
   0x5   :  { %2488 = vmatprep.subr.bf16.mxu0 %v2770_v15  ;;  %v2970_v37 = vld [vmem:[%s3434_s3] sm:$0xff]  ;;  %vm2061_vm11 = vcmask 1041408  }
   0x6   :  { %v66_v27 = vrot.slane %v30_v25, %v2949_v24  ;;  %v72_v30 = vrot.slane %v30_v25, %v2955_v26  ;;  %v103_v38 = vrot.slane %v2970_v37, %v2949_v24 }
   0x7   :  { %40 = vadd.xlane.f32.xlu0 %v39_v3 }
   0x8   :  { %2490 = vmatpush3.bf16.msra.mxu0 %v2770_v15  ;;  %v3041_v15 = vld [vmem:[%s3435_s1 + $0x18] sm:$0xff] }
  0x90   :  { %v38_v4 = vpop.xlane.xlu0 %37 }
  0x91   :  { %v43_v5 = vmul.f32 0.03125, %v38_v4 }
  0x93   :  { %v45_v6 = vsub.f32 %v20_v0, %v43_v5 }
  0x94   :  { %v41_v7 = vpop.xlane.xlu0 %40 }
  0x95   :  { %v44_v8 = vmul.f32 0.03125, %v41_v7  ;;  %v47_v9 = vmul.f32 %v45_v6, %v45_v6  ;;  %v3029_v7 = vld [vmem:[%s3435_s1 + $0x8] sm:$0xff] }
  0x97   :  { %v46_v10 = vsub.f32 %v21_v1, %v44_v8  ;;  %v49_v11 = vsel %vm35_vm0, %v47_v9, 0.0 }
  0x98   :  { %50 = vadd.xlane.f32.xlu1 %v49_v11 }
  0x99   :  { %v48_v12 = vmul.f32 %v46_v10, %v46_v10 }
  0x9b   :  { %v52_v13 = vsel %vm35_vm0, %v48_v12, 0.0 }
  0x9c   :  { %53 = vadd.xlane.f32.xlu1 %v52_v13 }
 0x125   :  { %v51_v16 = vpop.xlane.xlu1 %50 }
 0x126   :  { %v55_v17 = vmul.f32 0.03125, %v51_v16 }
 0x128   :  { %v57_v19 = vadd.f32 1e-05, %v55_v17 }
 0x129   :  { %v54_v20 = vpop.xlane.xlu1 %53 }
 0x12a   :  { %2791 = vrsqrt.f32 %v57_v19  ;;  %v56_v21 = vmul.f32 0.03125, %v54_v20 }
 0x12c   :  { %v58_v23 = vadd.f32 1e-05, %v56_v21 }
 0x12e   :  { %2793 = vrsqrt.f32 %v58_v23  ;;  %v3049_v23 = vld [vmem:[%s3435_s1 + $0x10] sm:$0xff] }
 0x134   :  { %v2792_v28 = vpop.eup %2791 }
 0x135   :  { %v61_v29 = vmul.f32 %v2792_v28, %v45_v6 }
 0x137   :  { %v67_v31 = vmul.f32 %v66_v27, %v61_v29 }
 0x138   :  { %v2794_v32 = vpop.eup %2793 }
 0x139   :  { %v62_v33 = vmul.f32 %v2794_v32, %v46_v10  ;;  %v2959_v34 = vadd.f32 %v72_v30, %v67_v31  ;;  %v3034_v10 = vld [vmem:[%s3435_s1] sm:$0xff] }
 0x13b   :  { %v68_v35 = vmul.f32 %v66_v27, %v62_v33  ;;  %2280 = vmatprep.mubr.msk.f32.mxu0 %vm35_vm0, %v2959_v34  ;;  %v3054_v27 = vld [vmem:[%s3435_s1 + $0x28] sm:$0xff] }
 0x13d   :  { %v2963_v36 = vadd.f32 %v72_v30, %v68_v35  ;;  %v3062_v35 = vld [vmem:[%s3435_s1 + $0x20] sm:$0xff] }
 0x13f   :  { %2281 = vmatmul.mubr.msk.f32.vlgmr.msra.gmra.mrb[0].mxu0 %vm35_vm0, %v2963_v36 }
 0x212   :  { %v2282_v39 = vpop.f32.mrb[0].mxu0 }
 0x213   :  { %v182_v40 = vadd.f32 %v2282_v39, %v103_v38  ;;  %v176_v41 = vpop.f32.mrb[1].mxu0  ;;  %v3067_v39 = vld [vmem:[%s3435_s1 + $0x38] sm:$0xff] }
 0x214   :  { %v177_v42 = vadd.f32 %v176_v41, %v103_v38 }
 0x215   :  { %189 = vrot.lane.b32.xlu1 %v182_v40, %s2888_s29 }
 0x216   :  { %187 = vrot.lane.b32.xlu0 %v177_v42, %s2888_s29  ;;  %2299 = vmatprep.mubr.msk.f32.mxu1 %vm215_vm1, %v177_v42  ;;  %v2979_v43 = vpack.i.bf16 %v182_v40, %v177_v42 }
 0x219   :  { %191 = vrot.lane.b32.xlu1 %v177_v42, %s2889_s30 }
 0x21a   :  { %195 = vrot.lane.b32.xlu0 %v177_v42, %s2890_s6 }
 0x21d   :  { %193 = vrot.lane.b32.xlu1 %v182_v40, %s2889_s30 }
 0x21e   :  { %2686 = vrot.lane.b32.xlu0 %v2979_v43, %s2891_s7 }
 0x221   :  { %197 = vrot.lane.b32.xlu1 %v182_v40, %s2890_s6 }
 0x287   :  { %v190_v44 = vpop.permute.xlu1 %189 }
 0x288   :  { %v188_v45 = vpop.permute.xlu0 %187 }
 0x289   :  { %v2985_v46 = vpack.i.bf16 %v190_v44, %v188_v45 }
 0x28b   :  { %v192_v47 = vpop.permute.xlu1 %191  ;;  %2691 = vrot.lane.b32.xlu1 %v2985_v46, %s2891_s7 }
 0x28c   :  { %v196_v48 = vpop.permute.xlu0 %195 }
 0x28f   :  { %v194_v49 = vpop.permute.xlu1 %193 }
 0x290   :  { %v2989_v50 = vpack.i.bf16 %v194_v49, %v192_v47  ;;  %v2687_v51 = vpop.permute.xlu0 %2686 }
 0x291   :  { %v2689_v52 = vunpack.i.h.bf16 %v2687_v51  ;;  %v2688_v53 = vunpack.i.l.bf16 %v2687_v51 }
 0x292   :  { %2696 = vrot.lane.b32.xlu0 %v2989_v50, %s2891_s7 }
 0x293   :  { %v198_v55 = vpop.permute.xlu1 %197  ;;  %v2491_v56 = vpack.c.bf16 %v2689_v52, %v2688_v53 }
 0x294   :  { %v2999_v57 = vpack.i.bf16 %v198_v55, %v196_v48 }
 0x295   :  { %2493 = vmatprep.subr.msk.bf16.mxu1 %vm2995_vm2, %v2491_v56 }
 0x296   :  { %2701 = vrot.lane.b32.xlu1 %v2999_v57, %s2891_s7  ;;  %2496 = vmatpush3.bf16.xpose.msk.msra.mxu1 %vm2995_vm2, %v2491_v56 }
 0x2fd   :  { %v2692_v58 = vpop.permute.xlu1 %2691 }
 0x2fe   :  { %v2694_v59 = vunpack.i.h.bf16 %v2692_v58  ;;  %v2693_v60 = vunpack.i.l.bf16 %v2692_v58 }
 0x300   :  { %v2497_v61 = vpack.c.bf16 %v2694_v59, %v2693_v60 }
 0x302   :  { %2499 = vmatprep.subr.msk.bf16.mxu1 %vm2995_vm2, %v2497_v61 }
 0x303   :  { %2502 = vmatpush3.bf16.xpose.msk.msra.mxu1 %vm2995_vm2, %v2497_v61 }
 0x304   :  { %v2697_v62 = vpop.permute.xlu0 %2696 }
 0x305   :  { %v2699_v63 = vunpack.i.h.bf16 %v2697_v62  ;;  %v2698_v0 = vunpack.i.l.bf16 %v2697_v62 }
 0x307   :  { %v2503_v1 = vpack.c.bf16 %v2699_v63, %v2698_v0 }
 0x308   :  { %v2702_v2 = vpop.permute.xlu1 %2701 }
 0x309   :  { %v2704_v3 = vunpack.i.h.bf16 %v2702_v2  ;;  %v2703_v4 = vunpack.i.l.bf16 %v2702_v2  ;;  %2505 = vmatprep.subr.msk.bf16.mxu1 %vm2995_vm2, %v2503_v1 }
 0x30b   :  { %v2509_v5 = vpack.c.bf16 %v2704_v3, %v2703_v4  ;;  %2508 = vmatpush3.bf16.xpose.msk.msra.mxu1 %vm2995_vm2, %v2503_v1 }
 0x30d   :  { %2511 = vmatprep.subr.msk.bf16.mxu1 %vm2995_vm2, %v2509_v5 }
 0x313   :  { %2514 = vmatpush3.bf16.xpose.msk.msra.mxu1 %vm2995_vm2, %v2509_v5 }
 0x31a   :  { %2300 = vmatmul.mubr.msk.f32.vlgmr.msra.gmra.mrb[0].mxu1 %vm215_vm1, %v182_v40 }
 0x31b   :  { %2302 = vmatprep.mubr.msk.f32.mxu1 %vm215_vm1, %v188_v45 }
 0x31e   :  { %2303 = vmatmul.mubr.msk.f32.gmra.mrb[2].mxu1 %vm215_vm1, %v190_v44 }
 0x31f   :  { %2305 = vmatprep.mubr.msk.f32.mxu1 %vm215_vm1, %v192_v47 }
 0x322   :  { %2306 = vmatmul.mubr.msk.f32.gmra.mrb[4].mxu1 %vm215_vm1, %v194_v49  ;;  %v3076_v49 = vld [vmem:[%s3435_s1 + $0x30] sm:$0xff] }
 0x323   :  { %2308 = vmatprep.mubr.msk.f32.mxu1 %vm215_vm1, %v196_v48 }
 0x326   :  { %2309 = vmatmul.mubr.msk.f32.gmra.mrb[6].mxu1 %vm215_vm1, %v198_v55 }
 0x3ed   :  { %v2301_v6 = vpop.f32.mrb[0].mxu1 }
 0x3ee   :  { %v354_v8 = vmul.f32 0.35355338, %v2301_v6  ;;  %v314_v9 = vpop.f32.mrb[1].mxu1 }
 0x3ef   :  { %v353_v11 = vmul.f32 0.35355338, %v314_v9 }
 0x3f0   :  { %v362_v12 = vadd.f32 %v354_v8, %v3029_v7 }
 0x3f1   :  { %v2304_v13 = vpop.f32.mrb[2].mxu1  ;;  %v361_v14 = vadd.f32 %v353_v11, %v3034_v10 }
 0x3f2   :  { %v356_v16 = vmul.f32 0.35355338, %v2304_v13  ;;  %v324_v17 = vpop.f32.mrb[3].mxu1  ;;  %v373_v18 = vsel %vm369_vm3, %v362_v12, -inf }
 0x3f3   :  { %v355_v19 = vmul.f32 0.35355338, %v324_v17  ;;  %374 = vmax.xlane.f32.xlu1 %v373_v18  ;;  %v370_v20 = vsel %vm369_vm3, %v361_v14, -inf }
 0x3f4   :  { %371 = vmax.xlane.f32.xlu0 %v370_v20  ;;  %v364_v21 = vadd.f32 %v356_v16, %v3041_v15 }
 0x3f5   :  { %v2307_v25 = vpop.f32.mrb[4].mxu1  ;;  %v363_v32 = vadd.f32 %v355_v19, %v3049_v23 }
 0x3f6   :  { %v358_v28 = vmul.f32 0.35355338, %v2307_v25  ;;  %v334_v29 = vpop.f32.mrb[5].mxu1  ;;  %v379_v30 = vsel %vm369_vm3, %v364_v21, -inf }
 0x3f7   :  { %v357_v31 = vmul.f32 0.35355338, %v334_v29  ;;  %v376_v45 = vsel %vm369_vm3, %v363_v32, -inf }
 0x3f8   :  { %380 = vmax.xlane.f32.xlu0 %v379_v30  ;;  %v366_v33 = vadd.f32 %v358_v28, %v3054_v27 }
 0x3f9   :  { %v2310_v38 = vpop.f32.mrb[6].mxu1  ;;  %v365_v47 = vadd.f32 %v357_v31, %v3062_v35 }
 0x3fa   :  { %v360_v40 = vmul.f32 0.35355338, %v2310_v38  ;;  %v344_v41 = vpop.f32.mrb[7].mxu1  ;;  %v385_v42 = vsel %vm369_vm3, %v366_v33, -inf }
 0x3fb   :  { %v359_v44 = vmul.f32 0.35355338, %v344_v41  ;;  %386 = vmax.xlane.f32.xlu1 %v385_v42  ;;  %v382_v52 = vsel %vm369_vm3, %v365_v47, -inf }
 0x3fc   :  { %377 = vmax.xlane.f32.xlu0 %v376_v45  ;;  %v368_v48 = vadd.f32 %v360_v40, %v3067_v39 }
 0x3fd   :  { %v367_v53 = vadd.f32 %v359_v44, %v3076_v49 }
 0x3fe   :  { %v391_v51 = vsel %vm369_vm3, %v368_v48, -inf }
 0x3ff   :  { %392 = vmax.xlane.f32.xlu1 %v391_v51  ;;  %v388_v55 = vsel %vm369_vm3, %v367_v53, -inf }
 0x400   :  { %383 = vmax.xlane.f32.xlu0 %v382_v52 }
 0x404   :  { %389 = vmax.xlane.f32.xlu0 %v388_v55 }
 0x410   :  { %2711 = vrot.lane.b32.xlu1 %v2985_v46, %s2892_s23 }
 0x41a   :  { %2706 = vrot.lane.b32.xlu0 %v2979_v43, %s2892_s23 }
 0x480   :  { %v375_v56 = vpop.xlane.xlu1 %374 }
 0x481   :  { %v395_v58 = vsub.f32 %v362_v12, %v375_v56  ;;  %v372_v59 = vpop.xlane.xlu0 %371 }
 0x482   :  { %v394_v60 = vsub.f32 %v361_v14, %v372_v59 }
 0x483   :  { %v404_v61 = vmul.f32 1.442695, %v395_v58 }
 0x484   :  { %v402_v62 = vmul.f32 1.442695, %v394_v60 }
 0x485   :  { %2795 = vpow2.f32 %v404_v61  ;;  %v381_v63 = vpop.xlane.xlu0 %380 }
 0x486   :  { %2797 = vpow2.f32 %v402_v62  ;;  %v397_v0 = vsub.f32 %v364_v21, %v381_v63 }
 0x488   :  { %v408_v1 = vmul.f32 1.442695, %v397_v0  ;;  %v387_v2 = vpop.xlane.xlu1 %386 }
 0x489   :  { %v399_v3 = vsub.f32 %v366_v33, %v387_v2  ;;  %v378_v4 = vpop.xlane.xlu0 %377 }
 0x48a   :  { %2799 = vpow2.f32 %v408_v1  ;;  %v396_v5 = vsub.f32 %v363_v32, %v378_v4 }
 0x48b   :  { %v412_v46 = vmul.f32 1.442695, %v399_v3 }
 0x48c   :  { %v406_v6 = vmul.f32 1.442695, %v396_v5  ;;  %v393_v8 = vpop.xlane.xlu1 %392 }
 0x48d   :  { %2801 = vpow2.f32 %v412_v46  ;;  %v401_v43 = vsub.f32 %v368_v48, %v393_v8  ;;  %v384_v9 = vpop.xlane.xlu0 %383 }
 0x48e   :  { %2803 = vpow2.f32 %v406_v6  ;;  %v398_v11 = vsub.f32 %v365_v47, %v384_v9 }
 0x48f   :  { %v3086_v12 = vpop.eup %2795  ;;  %v416_v13 = vmul.f32 1.442695, %v401_v43  ;;  %v2769_v43 = vld [vmem:[%s3432_s2 + $0x4] ss:$16 sps:$4 sm:$0xff]  }
 0x490   :  { %v2798_v14 = vpop.eup %2797  ;;  %v410_v16 = vmul.f32 1.442695, %v398_v11  ;;  %v421_v17 = vsel %vm369_vm3, %v3086_v12, 0.0  ;;  %v2712_v25 = vpop.permute.xlu1 %2711 }
 0x491   :  { %2805 = vpow2.f32 %v416_v13  ;;  %422 = vadd.xlane.f32.xlu1 %v421_v17  ;;  %v390_v18 = vpop.xlane.xlu0 %389  ;;  %v418_v19 = vsel %vm369_vm3, %v2798_v14, 0.0  ;;  %v2714_v38 = vunpack.i.h.bf16 %v2712_v25  ;;  %v2713_v40 = vunpack.i.l.bf16 %v2712_v25 }
 0x492   :  { %2807 = vpow2.f32 %v410_v16  ;;  %v400_v20 = vsub.f32 %v367_v53, %v390_v18  ;;  %419 = vadd.xlane.f32.xlu0 %v418_v19 }
 0x493   :  { %v2519_v48 = vpack.c.bf16 %v2714_v38, %v2713_v40 }
 0x494   :  { %v3091_v21 = vpop.eup %2799  ;;  %v414_v28 = vmul.f32 1.442695, %v400_v20 }
 0x495   :  { %v2707_v29 = vpop.permute.xlu0 %2706  ;;  %v427_v30 = vsel %vm369_vm3, %v3091_v21, 0.0 }
 0x496   :  { %2809 = vpow2.f32 %v414_v28  ;;  %v2709_v31 = vunpack.i.h.bf16 %v2707_v29  ;;  %v2708_v32 = vunpack.i.l.bf16 %v2707_v29  ;;  %428 = vadd.xlane.f32.xlu1 %v427_v30 }
 0x497   :  { %v3095_v33 = vpop.eup %2801 }
 0x498   :  { %v2804_v41 = vpop.eup %2803  ;;  %v2515_v42 = vpack.c.bf16 %v2709_v31, %v2708_v32  ;;  %v433_v44 = vsel %vm369_vm3, %v3095_v33, 0.0 }
 0x499   :  { %v424_v45 = vsel %vm369_vm3, %v2804_v41, 0.0 }
 0x49a   :  { %434 = vadd.xlane.f32.xlu1 %v433_v44  ;;  %425 = vadd.xlane.f32.xlu0 %v424_v45 }
 0x49b   :  { %v3100_v47 = vpop.eup %2805  ;;  %2516 = vmatprep.subr.bf16.mxu0 %v2515_v42 }
 0x49c   :  { %v2808_v51 = vpop.eup %2807  ;;  %2518 = vmatpush3.bf16.msra.mxu0 %v2515_v42  ;;  %v439_v52 = vsel %vm369_vm3, %v3100_v47, 0.0 }
 0x49d   :  { %2520 = vmatprep.subr.bf16.mxu0 %v2519_v48  ;;  %v430_v53 = vsel %vm369_vm3, %v2808_v51, 0.0 }
 0x49e   :  { %440 = vadd.xlane.f32.xlu1 %v439_v52  ;;  %431 = vadd.xlane.f32.xlu0 %v430_v53 }
 0x4a0   :  { %v2810_v55 = vpop.eup %2809  ;;  %2522 = vmatpush3.bf16.msra.mxu0 %v2519_v48 }
 0x4a1   :  { %v436_v56 = vsel %vm369_vm3, %v2810_v55, 0.0 }
 0x4a2   :  { %437 = vadd.xlane.f32.xlu1 %v436_v56 }
 0x4b3   :  { %2721 = vrot.lane.b32.xlu1 %v2999_v57, %s2892_s23 }
 0x4b4   :  { %2716 = vrot.lane.b32.xlu0 %v2989_v50, %s2892_s23 }
 0x51e   :  { %v423_v58 = vpop.xlane.xlu1 %422 }
 0x51f   :  { %v420_v59 = vpop.xlane.xlu0 %419 }
 0x520   :  { %2811 = vrcp.f32 %v420_v59 }
 0x521   :  { %2813 = vrcp.f32 %v423_v58 }
 0x523   :  { %v429_v60 = vpop.xlane.xlu1 %428 }
 0x527   :  { %v435_v61 = vpop.xlane.xlu1 %434  ;;  %v426_v62 = vpop.xlane.xlu0 %425 }
 0x528   :  { %2815 = vrcp.f32 %v426_v62 }
 0x529   :  { %2817 = vrcp.f32 %v429_v60 }
 0x52a   :  { %v2812_v63 = vpop.eup %2811 }
 0x52b   :  { %v441_v0 = vpop.xlane.xlu1 %440  ;;  %v432_v1 = vpop.xlane.xlu0 %431  ;;  %v450_v2 = vmul.f32 %v2812_v63, %v2798_v14  ;;  %v646_v63 = vrot.slane %v2970_v37, %v2955_v26 }
 0x52c   :  { %2819 = vrcp.f32 %v432_v1  ;;  %v2814_v11 = vpop.eup %2813 }
 0x52d   :  { %2327 = vmatprep.mubr.msk.f32.mxu0 %vm369_vm3, %v450_v2  ;;  %2821 = vrcp.f32 %v435_v61  ;;  %v451_v14 = vmul.f32 %v2814_v11, %v3086_v12 }
 0x52f   :  { %v438_v3 = vpop.xlane.xlu1 %437  ;;  %v2717_v4 = vpop.permute.xlu0 %2716 }
 0x530   :  { %v2719_v57 = vunpack.i.h.bf16 %v2717_v4  ;;  %v2718_v5 = vunpack.i.l.bf16 %v2717_v4  ;;  %2823 = vrcp.f32 %v438_v3 }
 0x531   :  { %2825 = vrcp.f32 %v441_v0 }
 0x532   :  { %v2523_v50 = vpack.c.bf16 %v2719_v57, %v2718_v5  ;;  %v2816_v13 = vpop.eup %2815 }
 0x533   :  { %v2722_v46 = vpop.permute.xlu1 %2721  ;;  %v2818_v16 = vpop.eup %2817  ;;  %v452_v17 = vmul.f32 %v2816_v13, %v2804_v41 }
 0x534   :  { %v2724_v6 = vunpack.i.h.bf16 %v2722_v46  ;;  %v2723_v8 = vunpack.i.l.bf16 %v2722_v46  ;;  %2524 = vmatprep.subr.bf16.mxu0 %v2523_v50  ;;  %v453_v19 = vmul.f32 %v2818_v16, %v3091_v21  ;;  %v2772_v21 = vld [vmem:[%s3432_s2 + $0x24] ss:$16 sps:$4 sm:$0xff]  }
 0x535   :  { %2526 = vmatpush3.bf16.msra.mxu0 %v2523_v50 }
 0x536   :  { %v2527_v9 = vpack.c.bf16 %v2724_v6, %v2723_v8  ;;  %v2820_v18 = vpop.eup %2819 }
 0x537   :  { %v2822_v20 = vpop.eup %2821  ;;  %v454_v25 = vmul.f32 %v2820_v18, %v2808_v51 }
 0x538   :  { %2528 = vmatprep.subr.bf16.mxu0 %v2527_v9  ;;  %v455_v12 = vmul.f32 %v2822_v20, %v3095_v33 }
 0x539   :  { %2530 = vmatpush3.bf16.msra.mxu0 %v2527_v9 }
 0x53a   :  { %2532 = vmatprep.subr.bf16.mxu0 %v2769_v43  ;;  %v2824_v28 = vpop.eup %2823 }
 0x53b   :  { %v2826_v29 = vpop.eup %2825  ;;  %v456_v30 = vmul.f32 %v2824_v28, %v2810_v55 }
 0x53c   :  { %2328 = vmatmul.mubr.msk.f32.vlgmr.msra.gmra.mrb[2].mxu0 %vm369_vm3, %v451_v14  ;;  %v457_v31 = vmul.f32 %v2826_v29, %v3100_v47  ;;  %v3157_v29 = vsub.s32 4, %v2946_v22 }
 0x53d   :  { %2330 = vmatprep.mubr.msk.f32.mxu0 %vm369_vm3, %v452_v17  ;;  %2534 = vmatpush3.bf16.msra.mxu0 %v2769_v43  ;;  %v2776_v17 = vld [vmem:[%s3432_s2 + $0x28] ss:$16 sps:$4 sm:$0xff]  }
 0x53e   :  { %2536 = vmatprep.subr.bf16.mxu0 %v2772_v21 }
 0x540   :  { %2331 = vmatmul.mubr.msk.f32.gmra.mrb[4].mxu0 %vm369_vm3, %v453_v19 }
 0x541   :  { %2333 = vmatprep.mubr.msk.f32.mxu0 %vm369_vm3, %v454_v25  ;;  %2538 = vmatpush3.bf16.msra.mxu0 %v2772_v21 }
 0x544   :  { %2334 = vmatmul.mubr.msk.f32.gmra.mrb[6].mxu0 %vm369_vm3, %v455_v12 }
 0x545   :  { %2336 = vmatprep.mubr.msk.f32.mxu0 %vm369_vm3, %v456_v30  ;;  %v764_v30 = vsub.s32 5, %v2946_v22 }
 0x548   :  { %2337 = vmatmul.mubr.msk.f32.gmra.mrb[8].mxu0 %vm369_vm3, %v457_v31  ;;  %v759_v31 = vrot.slane %v2970_v37, %v3157_v29 }
 0x60f   :  { %v2329_v32 = vpop.f32.mrb[2].mxu0 }
 0x610   :  { %v572_v38 = vpop.f32.mrb[3].mxu0 }
 0x613   :  { %v2332_v40 = vpop.f32.mrb[4].mxu0 }
 0x614   :  { %615 = vrot.lane.b32.xlu1 %v2332_v40, %s2893_s27  ;;  %v582_v33 = vpop.f32.mrb[5].mxu0 }
 0x615   :  { %613 = vrot.lane.b32.xlu0 %v582_v33, %s2893_s27 }
 0x617   :  { %v2335_v41 = vpop.f32.mrb[6].mxu0 }
 0x618   :  { %623 = vrot.lane.b32.xlu1 %v2335_v41, %s2894_s28  ;;  %v592_v42 = vpop.f32.mrb[7].mxu0 }
 0x619   :  { %621 = vrot.lane.b32.xlu0 %v592_v42, %s2894_s28 }
 0x61b   :  { %v2338_v44 = vpop.f32.mrb[8].mxu0 }
 0x61c   :  { %631 = vrot.lane.b32.xlu1 %v2338_v44, %s2895_s8  ;;  %v602_v45 = vpop.f32.mrb[9].mxu0 }
 0x61d   :  { %629 = vrot.lane.b32.xlu0 %v602_v45, %s2895_s8 }
 0x686   :  { %v616_v47 = vpop.permute.xlu1 %615 }
 0x687   :  { %v614_v48 = vpop.permute.xlu0 %613  ;;  %v636_v56 = vsel %vm215_vm1, %v2329_v32, %v616_v47  ;;  %v2775_v47 = vld [vmem:[%s3432_s2 + $0xc] ss:$16 sps:$4 sm:$0xff]  }
 0x688   :  { %v635_v53 = vsel %vm215_vm1, %v572_v38, %v614_v48  ;;  %v765_v38 = vrot.slane %v2970_v37, %v764_v30  ;;  %v2778_v48 = vld [vmem:[%s3432_s2 + $0x2c] ss:$16 sps:$4 sm:$0xff]   ;;  %2549 = vmatprep.subr.msk.bf16.mxu1 %vm3175_vm6, %v2775_v47 }
 0x689   :  { %2552 = vmatpush3.bf16.xpose.msk.msra.mxu1 %vm3175_vm6, %v2775_v47 }
 0x68a   :  { %v624_v51 = vpop.permute.xlu1 %623  ;;  %2555 = vmatprep.subr.msk.bf16.mxu1 %vm3175_vm6, %v2778_v48 }
 0x68b   :  { %v622_v52 = vpop.permute.xlu0 %621  ;;  %v639_v60 = vsel %vm637_vm4, %v636_v56, %v624_v51 }
 0x68c   :  { %v638_v58 = vsel %vm637_vm4, %v635_v53, %v622_v52  ;;  %v3188_v52 = vsub.s32 2, %v2946_v22 }
 0x68e   :  { %v632_v55 = vpop.permute.xlu1 %631  ;;  %v771_v53 = vrot.slane %v2970_v37, %v3188_v52 }
 0x68f   :  { %v630_v59 = vpop.permute.xlu0 %629  ;;  %v642_v62 = vsel %vm640_vm5, %v639_v60, %v632_v55 }
 0x690   :  { %v641_v61 = vsel %vm640_vm5, %v638_v58, %v630_v59 }
 0x691   :  { %2347 = vmatprep.mubr.msk.f32.mxu0 %vm35_vm0, %v641_v61  ;;  %2558 = vmatpush3.bf16.xpose.msk.msra.mxu1 %vm3175_vm6, %v2778_v48 }
 0x692   :  { %2348 = vmatmul.mubr.msk.f32.vlgmr.msra.gmra.mrb[10].mxu0 %vm35_vm0, %v642_v62 }
 0x765   :  { %v2349_v0 = vpop.f32.mrb[10].mxu0 }
 0x766   :  { %v725_v1 = vadd.f32 %v2349_v0, %v646_v63  ;;  %v719_v2 = vpop.f32.mrb[11].mxu0 }
 0x767   :  { %v720_v3 = vadd.f32 %v719_v2, %v646_v63 }
 0x768   :  { %v729_v4 = vadd.f32 %v725_v1, %v2963_v36 }
 0x769   :  { %v728_v57 = vadd.f32 %v720_v3, %v2959_v34  ;;  %v2773_v34 = vld [vmem:[%s3432_s2 + $0x8] ss:$16 sps:$4 sm:$0xff]  }
 0x76a   :  { %v733_v5 = vsel %vm35_vm0, %v729_v4, 0.0  ;;  %2540 = vmatprep.subr.bf16.mxu0 %v2773_v34 }
 0x76b   :  { %734 = vadd.xlane.f32.xlu1 %v733_v5  ;;  %v730_v50 = vsel %vm35_vm0, %v728_v57, 0.0  ;;  %2542 = vmatpush3.bf16.msra.mxu0 %v2773_v34 }
 0x76c   :  { %731 = vadd.xlane.f32.xlu0 %v730_v50  ;;  %2544 = vmatprep.subr.bf16.mxu0 %v2776_v17 }
 0x76f   :  { %2546 = vmatpush3.bf16.msra.mxu0 %v2776_v17 }
 0x7f8   :  { %v735_v46 = vpop.xlane.xlu1 %734 }
 0x7f9   :  { %v737_v6 = vmul.f32 0.03125, %v735_v46  ;;  %v732_v8 = vpop.xlane.xlu0 %731 }
 0x7fa   :  { %v736_v43 = vmul.f32 0.03125, %v732_v8 }
 0x7fb   :  { %v739_v9 = vsub.f32 %v729_v4, %v737_v6 }
 0x7fc   :  { %v738_v11 = vsub.f32 %v728_v57, %v736_v43 }
 0x7fd   :  { %v741_v16 = vmul.f32 %v739_v9, %v739_v9 }
 0x7fe   :  { %v740_v13 = vmul.f32 %v738_v11, %v738_v11 }
 0x7ff   :  { %v745_v36 = vsel %vm35_vm0, %v741_v16, 0.0 }
 0x800   :  { %v742_v14 = vsel %vm35_vm0, %v740_v13, 0.0  ;;  %v3195_v13 = vsub.s32 3, %v2946_v22 }
 0x801   :  { %743 = vadd.xlane.f32.xlu0 %v742_v14 }
 0x802   :  { %v874_v14 = vrot.slane %v2970_v37, %v3195_v13 }
 0x805   :  { %746 = vadd.xlane.f32.xlu0 %v745_v36 }
 0x88e   :  { %v744_v18 = vpop.xlane.xlu0 %743 }
 0x88f   :  { %v748_v19 = vmul.f32 0.03125, %v744_v18 }
 0x891   :  { %v750_v20 = vadd.f32 1e-05, %v748_v19 }
 0x892   :  { %v747_v25 = vpop.xlane.xlu0 %746 }
 0x893   :  { %2827 = vrsqrt.f32 %v750_v20  ;;  %v749_v28 = vmul.f32 0.03125, %v747_v25 }
 0x895   :  { %v751_v12 = vadd.f32 1e-05, %v749_v28 }
 0x897   :  { %2829 = vrsqrt.f32 %v751_v12 }
 0x89d   :  { %v2828_v21 = vpop.eup %2827 }
 0x89e   :  { %v754_v32 = vmul.f32 %v2828_v21, %v738_v11 }
 0x8a0   :  { %v760_v40 = vmul.f32 %v759_v31, %v754_v32 }
 0x8a1   :  { %v2830_v33 = vpop.eup %2829 }
 0x8a2   :  { %v755_v41 = vmul.f32 %v2830_v33, %v739_v9  ;;  %v766_v42 = vadd.f32 %v765_v38, %v760_v40 }
 0x8a4   :  { %v761_v44 = vmul.f32 %v759_v31, %v755_v41  ;;  %2358 = vmatprep.mubr.msk.f32.mxu0 %vm35_vm0, %v766_v42 }
 0x8a6   :  { %v767_v45 = vadd.f32 %v765_v38, %v761_v44 }
 0x8a8   :  { %2359 = vmatmul.mubr.msk.f32.vlgmr.msra.gmra.mrb[12].mxu0 %vm35_vm0, %v767_v45 }
 0x97b   :  { %v2360_v55 = vpop.f32.mrb[12].mxu0 }
 0x97c   :  { %v850_v56 = vadd.f32 %v2360_v55, %v771_v53  ;;  %v844_v58 = vpop.f32.mrb[13].mxu0 }
 0x97d   :  { %v845_v59 = vadd.f32 %v844_v58, %v771_v53 }
 0x97e   :  { %v856_v60 = vmul.f32 0.044715, %v850_v56  ;;  %v854_v43 = vmul.f32 0.5, %v850_v56 }
 0x97f   :  { %v855_v61 = vmul.f32 0.044715, %v845_v59  ;;  %v853_v6 = vmul.f32 0.5, %v845_v59 }
 0x980   :  { %v858_v62 = vmul.f32 %v856_v60, %v850_v56  ;;  %v1004_v60 = vsub.s32 7, %v2946_v22 }
 0x981   :  { %v857_v63 = vmul.f32 %v855_v61, %v845_v59 }
 0x982   :  { %v860_v0 = vmul.f32 %v858_v62, %v850_v56 }
 0x983   :  { %v859_v1 = vmul.f32 %v857_v63, %v845_v59 }
 0x984   :  { %v862_v2 = vadd.f32 %v860_v0, %v850_v56 }
 0x985   :  { %v861_v3 = vadd.f32 %v859_v1, %v845_v59  ;;  %v998_v59 = vsub.s32 6, %v2946_v22 }
 0x986   :  { %v864_v4 = vmul.f32 0.7978846, %v862_v2  ;;  %v1005_v2 = vrot.slane %v2970_v37, %v1004_v60 }
 0x987   :  { %v863_v57 = vmul.f32 0.7978846, %v861_v3  ;;  %v999_v61 = vrot.slane %v2970_v37, %v998_v59 }
 0x988   :  { %2831 = vtanh.f32 %v864_v4 }
 0x989   :  { %2833 = vtanh.f32 %v863_v57 }
 0x992   :  { %v2832_v5 = vpop.eup %2831 }
 0x993   :  { %v2834_v50 = vpop.eup %2833  ;;  %v868_v46 = vadd.f32 1.0, %v2832_v5 }
 0x994   :  { %v867_v8 = vadd.f32 1.0, %v2834_v50  ;;  %v3228_v50 = vld [vmem:[%s3434_s3 + $0x8] sm:$0xff] }
 0x995   :  { %v870_v11 = vmul.f32 %v868_v46, %v854_v43  ;;  %v1038_v37 = vrot.slane %v3228_v50, %v2949_v24 }
 0x996   :  { %v869_v9 = vmul.f32 %v867_v8, %v853_v6 }
 0x998   :  { %2369 = vmatprep.mubr.msk.f32.mxu1 %vm369_vm3, %v869_v9 }
 0x999   :  { %2370 = vmatmul.mubr.msk.f32.vlgmr.msra.gmra.mrb[8].mxu1 %vm369_vm3, %v870_v11 }
 0xa6c   :  { %v2371_v16 = vpop.f32.mrb[8].mxu1 }
 0xa6d   :  { %v965_v36 = vadd.f32 %v2371_v16, %v874_v14  ;;  %v959_v34 = vpop.f32.mrb[9].mxu1 }
 0xa6e   :  { %v960_v17 = vadd.f32 %v959_v34, %v874_v14 }
 0xa6f   :  { %v969_v18 = vadd.f32 %v965_v36, %v767_v45  ;;  %v2781_v45 = vld [vmem:[%s3432_s2 + $0x60] ss:$16 sps:$4 sm:$0xff]  }
 0xa70   :  { %v968_v19 = vadd.f32 %v960_v17, %v766_v42  ;;  %v2779_v42 = vld [vmem:[%s3432_s2 + $0x40] ss:$16 sps:$4 sm:$0xff]  }
 0xa71   :  { %v973_v20 = vsel %vm35_vm0, %v969_v18, 0.0  ;;  %2560 = vmatprep.subr.bf16.mxu0 %v2779_v42 }
 0xa72   :  { %974 = vadd.xlane.f32.xlu1 %v973_v20  ;;  %v970_v25 = vsel %vm35_vm0, %v968_v19, 0.0  ;;  %2562 = vmatpush3.bf16.msra.mxu0 %v2779_v42 }
 0xa73   :  { %971 = vadd.xlane.f32.xlu0 %v970_v25  ;;  %2564 = vmatprep.subr.bf16.mxu0 %v2781_v45 }
 0xa76   :  { %2566 = vmatpush3.bf16.msra.mxu0 %v2781_v45 }
 0xaff   :  { %v975_v28 = vpop.xlane.xlu1 %974 }
 0xb00   :  { %v977_v12 = vmul.f32 0.03125, %v975_v28  ;;  %v972_v31 = vpop.xlane.xlu0 %971 }
 0xb01   :  { %v976_v21 = vmul.f32 0.03125, %v972_v31 }
 0xb02   :  { %v979_v32 = vsub.f32 %v969_v18, %v977_v12 }
 0xb03   :  { %v978_v38 = vsub.f32 %v968_v19, %v976_v21 }
 0xb04   :  { %v981_v40 = vmul.f32 %v979_v32, %v979_v32 }
 0xb05   :  { %v980_v33 = vmul.f32 %v978_v38, %v978_v38 }
 0xb06   :  { %v985_v41 = vsel %vm35_vm0, %v981_v40, 0.0 }
 0xb07   :  { %986 = vadd.xlane.f32.xlu1 %v985_v41  ;;  %v982_v44 = vsel %vm35_vm0, %v980_v33, 0.0 }
 0xb08   :  { %983 = vadd.xlane.f32.xlu0 %v982_v44 }
 0xb94   :  { %v987_v47 = vpop.xlane.xlu1 %986 }
 0xb95   :  { %v989_v48 = vmul.f32 0.03125, %v987_v47  ;;  %v984_v53 = vpop.xlane.xlu0 %983 }
 0xb96   :  { %v988_v55 = vmul.f32 0.03125, %v984_v53 }
 0xb97   :  { %v991_v56 = vadd.f32 1e-05, %v989_v48 }
 0xb98   :  { %v990_v58 = vadd.f32 1e-05, %v988_v55 }
 0xb99   :  { %2835 = vrsqrt.f32 %v991_v56 }
 0xb9a   :  { %2837 = vrsqrt.f32 %v990_v58 }
 0xba3   :  { %v2836_v62 = vpop.eup %2835 }
 0xba4   :  { %v2838_v63 = vpop.eup %2837  ;;  %v995_v0 = vmul.f32 %v2836_v62, %v979_v32 }
 0xba5   :  { %v994_v1 = vmul.f32 %v2838_v63, %v978_v38 }
 0xba6   :  { %v1001_v3 = vmul.f32 %v999_v61, %v995_v0 }
 0xba7   :  { %v1000_v4 = vmul.f32 %v999_v61, %v994_v1 }
 0xba8   :  { %v3219_v5 = vadd.f32 %v1005_v2, %v1001_v3 }
 0xba9   :  { %v3217_v57 = vadd.f32 %v1005_v2, %v1000_v4 }
 0xbab   :  { %2380 = vmatprep.mubr.msk.f32.mxu0 %vm35_vm0, %v3217_v57 }
 0xbac   :  { %2381 = vmatmul.mubr.msk.f32.vlgmr.msra.gmra.mrb[14].mxu0 %vm35_vm0, %v3219_v5 }
 0xc7f   :  { %v2382_v46 = vpop.f32.mrb[14].mxu0 }
 0xc80   :  { %v1117_v6 = vadd.f32 %v2382_v46, %v1038_v37  ;;  %v1111_v8 = vpop.f32.mrb[15].mxu0 }
 0xc81   :  { %v1112_v43 = vadd.f32 %v1111_v8, %v1038_v37 }
 0xc82   :  { %1124 = vrot.lane.b32.xlu1 %v1117_v6, %s2888_s29 }
 0xc83   :  { %1122 = vrot.lane.b32.xlu0 %v1112_v43, %s2888_s29  ;;  %2399 = vmatprep.mubr.msk.f32.mxu1 %vm215_vm1, %v1112_v43  ;;  %v3237_v9 = vpack.i.bf16 %v1117_v6, %v1112_v43 }
 0xc86   :  { %1126 = vrot.lane.b32.xlu1 %v1112_v43, %s2889_s30 }
 0xc87   :  { %1130 = vrot.lane.b32.xlu0 %v1112_v43, %s2890_s6 }
 0xc8a   :  { %1128 = vrot.lane.b32.xlu1 %v1117_v6, %s2889_s30 }
 0xc8b   :  { %2726 = vrot.lane.b32.xlu0 %v3237_v9, %s2891_s7 }
 0xc8e   :  { %1132 = vrot.lane.b32.xlu1 %v1117_v6, %s2890_s6 }
 0xcf4   :  { %v1125_v24 = vpop.permute.xlu1 %1124 }
 0xcf5   :  { %v1123_v11 = vpop.permute.xlu0 %1122 }
 0xcf6   :  { %v3243_v14 = vpack.i.bf16 %v1125_v24, %v1123_v11 }
 0xcf8   :  { %v1127_v16 = vpop.permute.xlu1 %1126  ;;  %2731 = vrot.lane.b32.xlu1 %v3243_v14, %s2891_s7 }
 0xcf9   :  { %v1131_v36 = vpop.permute.xlu0 %1130 }
 0xcfc   :  { %v1129_v34 = vpop.permute.xlu1 %1128 }
 0xcfd   :  { %v3247_v17 = vpack.i.bf16 %v1129_v34, %v1127_v16  ;;  %v2727_v18 = vpop.permute.xlu0 %2726 }
 0xcfe   :  { %v2729_v19 = vunpack.i.h.bf16 %v2727_v18  ;;  %v2728_v20 = vunpack.i.l.bf16 %v2727_v18 }
 0xcff   :  { %2736 = vrot.lane.b32.xlu0 %v3247_v17, %s2891_s7 }
 0xd00   :  { %v2567_v25 = vpack.c.bf16 %v2729_v19, %v2728_v20  ;;  %v1133_v28 = vpop.permute.xlu1 %1132 }
 0xd01   :  { %v3251_v12 = vpack.i.bf16 %v1133_v28, %v1131_v36 }
 0xd02   :  { %2569 = vmatprep.subr.msk.bf16.mxu1 %vm2995_vm2, %v2567_v25 }
 0xd03   :  { %2741 = vrot.lane.b32.xlu1 %v3251_v12, %s2891_s7  ;;  %2572 = vmatpush3.bf16.xpose.msk.msra.mxu1 %vm2995_vm2, %v2567_v25 }
 0xd6a   :  { %v2732_v31 = vpop.permute.xlu1 %2731 }
 0xd6b   :  { %v2734_v21 = vunpack.i.h.bf16 %v2732_v31  ;;  %v2733_v32 = vunpack.i.l.bf16 %v2732_v31 }
 0xd6d   :  { %v2573_v38 = vpack.c.bf16 %v2734_v21, %v2733_v32 }
 0xd6f   :  { %2575 = vmatprep.subr.msk.bf16.mxu1 %vm2995_vm2, %v2573_v38 }
 0xd70   :  { %2578 = vmatpush3.bf16.xpose.msk.msra.mxu1 %vm2995_vm2, %v2573_v38 }
 0xd71   :  { %v2737_v40 = vpop.permute.xlu0 %2736 }
 0xd72   :  { %v2739_v33 = vunpack.i.h.bf16 %v2737_v40  ;;  %v2738_v41 = vunpack.i.l.bf16 %v2737_v40 }
 0xd74   :  { %v2579_v44 = vpack.c.bf16 %v2739_v33, %v2738_v41 }
 0xd75   :  { %v2742_v42 = vpop.permute.xlu1 %2741 }
 0xd76   :  { %v2744_v45 = vunpack.i.h.bf16 %v2742_v42  ;;  %v2743_v47 = vunpack.i.l.bf16 %v2742_v42  ;;  %2581 = vmatprep.subr.msk.bf16.mxu1 %vm2995_vm2, %v2579_v44 }
 0xd78   :  { %v2585_v48 = vpack.c.bf16 %v2744_v45, %v2743_v47  ;;  %2584 = vmatpush3.bf16.xpose.msk.msra.mxu1 %vm2995_vm2, %v2579_v44 }
 0xd7a   :  { %2587 = vmatprep.subr.msk.bf16.mxu1 %vm2995_vm2, %v2585_v48 }
 0xd80   :  { %2590 = vmatpush3.bf16.xpose.msk.msra.mxu1 %vm2995_vm2, %v2585_v48 }
 0xd87   :  { %2400 = vmatmul.mubr.msk.f32.vlgmr.msra.gmra.mrb[10].mxu1 %vm215_vm1, %v1117_v6 }
 0xd88   :  { %2402 = vmatprep.mubr.msk.f32.mxu1 %vm215_vm1, %v1123_v11 }
 0xd8b   :  { %2403 = vmatmul.mubr.msk.f32.gmra.mrb[12].mxu1 %vm215_vm1, %v1125_v24 }
 0xd8c   :  { %2405 = vmatprep.mubr.msk.f32.mxu1 %vm215_vm1, %v1127_v16 }
 0xd8f   :  { %2406 = vmatmul.mubr.msk.f32.gmra.mrb[14].mxu1 %vm215_vm1, %v1129_v34 }
 0xd90   :  { %2408 = vmatprep.mubr.msk.f32.mxu1 %vm215_vm1, %v1131_v36 }
 0xd93   :  { %2409 = vmatmul.mubr.msk.f32.gmra.mrb[16].mxu1 %vm215_vm1, %v1133_v28 }
 0xe5a   :  { %v2401_v53 = vpop.f32.mrb[10].mxu1 }
 0xe5b   :  { %v1288_v55 = vmul.f32 0.35355338, %v2401_v53  ;;  %v1248_v56 = vpop.f32.mrb[11].mxu1 }
 0xe5c   :  { %v1287_v58 = vmul.f32 0.35355338, %v1248_v56 }
 0xe5d   :  { %v1296_v54 = vadd.f32 %v1288_v55, %v3029_v7 }
 0xe5e   :  { %v2404_v61 = vpop.f32.mrb[12].mxu1  ;;  %v1295_v62 = vadd.f32 %v1287_v58, %v3034_v10 }
 0xe5f   :  { %v1290_v63 = vmul.f32 0.35355338, %v2404_v61  ;;  %v1258_v0 = vpop.f32.mrb[13].mxu1  ;;  %v1306_v1 = vsel %vm369_vm3, %v1296_v54, -inf }
 0xe60   :  { %v1289_v2 = vmul.f32 0.35355338, %v1258_v0  ;;  %1307 = vmax.xlane.f32.xlu1 %v1306_v1  ;;  %v1303_v3 = vsel %vm369_vm3, %v1295_v62, -inf }
 0xe61   :  { %1304 = vmax.xlane.f32.xlu0 %v1303_v3  ;;  %v1298_v4 = vadd.f32 %v1290_v63, %v3041_v15 }
 0xe62   :  { %v2407_v37 = vpop.f32.mrb[14].mxu1  ;;  %v1297_v43 = vadd.f32 %v1289_v2, %v3049_v23 }
 0xe63   :  { %v1292_v46 = vmul.f32 0.35355338, %v2407_v37  ;;  %v1268_v6 = vpop.f32.mrb[15].mxu1  ;;  %v1312_v8 = vsel %vm369_vm3, %v1298_v4, -inf }
 0xe64   :  { %v1291_v7 = vmul.f32 0.35355338, %v1268_v6  ;;  %v1309_v15 = vsel %vm369_vm3, %v1297_v43, -inf }
 0xe65   :  { %1313 = vmax.xlane.f32.xlu0 %v1312_v8  ;;  %v1300_v10 = vadd.f32 %v1292_v46, %v3054_v27 }
 0xe66   :  { %v2410_v24 = vpop.f32.mrb[16].mxu1  ;;  %v1299_v18 = vadd.f32 %v1291_v7, %v3062_v35 }
 0xe67   :  { %v1294_v11 = vmul.f32 0.35355338, %v2410_v24  ;;  %v1278_v16 = vpop.f32.mrb[17].mxu1  ;;  %v1318_v36 = vsel %vm369_vm3, %v1300_v10, -inf }
 0xe68   :  { %v1293_v34 = vmul.f32 0.35355338, %v1278_v16  ;;  %1319 = vmax.xlane.f32.xlu1 %v1318_v36  ;;  %v1315_v23 = vsel %vm369_vm3, %v1299_v18, -inf }
 0xe69   :  { %1310 = vmax.xlane.f32.xlu0 %v1309_v15  ;;  %v1302_v19 = vadd.f32 %v1294_v11, %v3067_v39 }
 0xe6a   :  { %v1301_v27 = vadd.f32 %v1293_v34, %v3076_v49 }
 0xe6b   :  { %v1324_v20 = vsel %vm369_vm3, %v1302_v19, -inf }
 0xe6c   :  { %1325 = vmax.xlane.f32.xlu1 %v1324_v20  ;;  %v1321_v25 = vsel %vm369_vm3, %v1301_v27, -inf }
 0xe6d   :  { %1316 = vmax.xlane.f32.xlu0 %v1315_v23 }
 0xe71   :  { %1322 = vmax.xlane.f32.xlu0 %v1321_v25 }
 0xe7d   :  { %2751 = vrot.lane.b32.xlu1 %v3243_v14, %s2892_s23 }
 0xe87   :  { %2746 = vrot.lane.b32.xlu0 %v3237_v9, %s2892_s23 }
 0xeed   :  { %v1308_v35 = vpop.xlane.xlu1 %1307 }
 0xeee   :  { %v1328_v28 = vsub.f32 %v1296_v54, %v1308_v35  ;;  %v1305_v39 = vpop.xlane.xlu0 %1304 }
 0xeef   :  { %v1327_v31 = vsub.f32 %v1295_v62, %v1305_v39 }
 0xef0   :  { %v1337_v21 = vmul.f32 1.442695, %v1328_v28 }
 0xef1   :  { %v1335_v32 = vmul.f32 1.442695, %v1327_v31 }
 0xef2   :  { %2839 = vpow2.f32 %v1337_v21  ;;  %v1314_v38 = vpop.xlane.xlu0 %1313 }
 0xef3   :  { %2841 = vpow2.f32 %v1335_v32  ;;  %v1330_v49 = vsub.f32 %v1298_v4, %v1314_v38 }
 0xef5   :  { %v1341_v40 = vmul.f32 1.442695, %v1330_v49  ;;  %v1320_v33 = vpop.xlane.xlu1 %1319 }
 0xef6   :  { %v1332_v41 = vsub.f32 %v1300_v10, %v1320_v33  ;;  %v1311_v44 = vpop.xlane.xlu0 %1310 }
 0xef7   :  { %2843 = vpow2.f32 %v1341_v40  ;;  %v1329_v42 = vsub.f32 %v1297_v43, %v1311_v44 }
 0xef8   :  { %v1345_v14 = vmul.f32 1.442695, %v1332_v41 }
 0xef9   :  { %v1339_v45 = vmul.f32 1.442695, %v1329_v42  ;;  %v1326_v47 = vpop.xlane.xlu1 %1325 }
 0xefa   :  { %2845 = vpow2.f32 %v1345_v14  ;;  %v1334_v9 = vsub.f32 %v1302_v19, %v1326_v47  ;;  %v1317_v48 = vpop.xlane.xlu0 %1316 }
 0xefb   :  { %2847 = vpow2.f32 %v1339_v45  ;;  %v1331_v53 = vsub.f32 %v1299_v18, %v1317_v48 }
 0xefc   :  { %v3298_v55 = vpop.eup %2839  ;;  %v1349_v56 = vmul.f32 1.442695, %v1334_v9 }
 0xefd   :  { %v2842_v58 = vpop.eup %2841  ;;  %v1343_v54 = vmul.f32 1.442695, %v1331_v53  ;;  %v1354_v61 = vsel %vm369_vm3, %v3298_v55, 0.0  ;;  %v2752_v2 = vpop.permute.xlu1 %2751 }
 0xefe   :  { %2849 = vpow2.f32 %v1349_v56  ;;  %1355 = vadd.xlane.f32.xlu1 %v1354_v61  ;;  %v1323_v62 = vpop.xlane.xlu0 %1322  ;;  %v1351_v63 = vsel %vm369_vm3, %v2842_v58, 0.0  ;;  %v2754_v7 = vunpack.i.h.bf16 %v2752_v2  ;;  %v2753_v43 = vunpack.i.l.bf16 %v2752_v2 }
 0xeff   :  { %2851 = vpow2.f32 %v1343_v54  ;;  %v1333_v0 = vsub.f32 %v1301_v27, %v1323_v62  ;;  %1352 = vadd.xlane.f32.xlu0 %v1351_v63 }
 0xf00   :  { %v2595_v34 = vpack.c.bf16 %v2754_v7, %v2753_v43 }
 0xf01   :  { %v3303_v1 = vpop.eup %2843  ;;  %v1347_v3 = vmul.f32 1.442695, %v1333_v0 }
 0xf02   :  { %v2747_v4 = vpop.permute.xlu0 %2746  ;;  %v1360_v37 = vsel %vm369_vm3, %v3303_v1, 0.0 }
 0xf03   :  { %2853 = vpow2.f32 %v1347_v3  ;;  %v2749_v46 = vunpack.i.h.bf16 %v2747_v4  ;;  %v2748_v6 = vunpack.i.l.bf16 %v2747_v4  ;;  %1361 = vadd.xlane.f32.xlu1 %v1360_v37  ;;  %v2784_v3 = vld [vmem:[%s3432_s2 + $0x64] ss:$16 sps:$4 sm:$0xff]  }
 0xf04   :  { %v3307_v8 = vpop.eup %2845 }
 0xf05   :  { %v2848_v10 = vpop.eup %2847  ;;  %v2591_v24 = vpack.c.bf16 %v2749_v46, %v2748_v6  ;;  %v1366_v11 = vsel %vm369_vm3, %v3307_v8, 0.0 }
 0xf06   :  { %v1357_v16 = vsel %vm369_vm3, %v2848_v10, 0.0 }
 0xf07   :  { %1367 = vadd.xlane.f32.xlu1 %v1366_v11  ;;  %1358 = vadd.xlane.f32.xlu0 %v1357_v16 }
 0xf08   :  { %v3312_v36 = vpop.eup %2849  ;;  %2592 = vmatprep.subr.bf16.mxu0 %v2591_v24 }
 0xf09   :  { %v2852_v15 = vpop.eup %2851  ;;  %2594 = vmatpush3.bf16.msra.mxu0 %v2591_v24  ;;  %v1372_v18 = vsel %vm369_vm3, %v3312_v36, 0.0 }
 0xf0a   :  { %2596 = vmatprep.subr.bf16.mxu0 %v2595_v34  ;;  %v1363_v19 = vsel %vm369_vm3, %v2852_v15, 0.0 }
 0xf0b   :  { %1373 = vadd.xlane.f32.xlu1 %v1372_v18  ;;  %1364 = vadd.xlane.f32.xlu0 %v1363_v19 }
 0xf0d   :  { %v2854_v20 = vpop.eup %2853  ;;  %2598 = vmatpush3.bf16.msra.mxu0 %v2595_v34 }
 0xf0e   :  { %v1369_v23 = vsel %vm369_vm3, %v2854_v20, 0.0 }
 0xf0f   :  { %1370 = vadd.xlane.f32.xlu1 %v1369_v23 }
 0xf20   :  { %2761 = vrot.lane.b32.xlu1 %v3251_v12, %s2892_s23 }
 0xf21   :  { %2756 = vrot.lane.b32.xlu0 %v3247_v17, %s2892_s23 }
 0xf8b   :  { %v1356_v27 = vpop.xlane.xlu1 %1355 }
 0xf8c   :  { %v1353_v25 = vpop.xlane.xlu0 %1352 }
 0xf8d   :  { %2855 = vrcp.f32 %v1353_v25 }
 0xf8e   :  { %2857 = vrcp.f32 %v1356_v27 }
 0xf90   :  { %v1362_v35 = vpop.xlane.xlu1 %1361 }
 0xf94   :  { %v1368_v28 = vpop.xlane.xlu1 %1367  ;;  %v1359_v39 = vpop.xlane.xlu0 %1358 }
 0xf95   :  { %2859 = vrcp.f32 %v1359_v39 }
 0xf96   :  { %2861 = vrcp.f32 %v1362_v35  ;;  %v1577_v35 = vrot.slane %v3228_v50, %v2955_v26 }
 0xf97   :  { %v2856_v31 = vpop.eup %2855 }
 0xf98   :  { %v1374_v21 = vpop.xlane.xlu1 %1373  ;;  %v1365_v32 = vpop.xlane.xlu0 %1364  ;;  %v1383_v38 = vmul.f32 %v2856_v31, %v2842_v58 }
 0xf99   :  { %2863 = vrcp.f32 %v1365_v32  ;;  %v2858_v45 = vpop.eup %2857 }
 0xf9a   :  { %2427 = vmatprep.mubr.msk.f32.mxu0 %vm369_vm3, %v1383_v38  ;;  %2865 = vrcp.f32 %v1368_v28  ;;  %v1384_v9 = vmul.f32 %v2858_v45, %v3298_v55 }
 0xf9c   :  { %v1371_v49 = vpop.xlane.xlu1 %1370  ;;  %v2757_v40 = vpop.permute.xlu0 %2756 }
 0xf9d   :  { %v2759_v12 = vunpack.i.h.bf16 %v2757_v40  ;;  %v2758_v33 = vunpack.i.l.bf16 %v2757_v40  ;;  %2867 = vrcp.f32 %v1371_v49 }
 0xf9e   :  { %2869 = vrcp.f32 %v1374_v21 }
 0xf9f   :  { %v2599_v17 = vpack.c.bf16 %v2759_v12, %v2758_v33  ;;  %v2860_v47 = vpop.eup %2859 }
 0xfa0   :  { %v2762_v41 = vpop.permute.xlu1 %2761  ;;  %v2862_v48 = vpop.eup %2861  ;;  %v1385_v53 = vmul.f32 %v2860_v47, %v2848_v10  ;;  %v2787_v47 = vld [vmem:[%s3432_s2 + $0x4c] ss:$16 sps:$4 sm:$0xff]  }
 0xfa1   :  { %v2764_v44 = vunpack.i.h.bf16 %v2762_v41  ;;  %v2763_v42 = vunpack.i.l.bf16 %v2762_v41  ;;  %2600 = vmatprep.subr.bf16.mxu0 %v2599_v17  ;;  %v1386_v58 = vmul.f32 %v2862_v48, %v3303_v1  ;;  %v2783_v1 = vld [vmem:[%s3432_s2 + $0x44] ss:$16 sps:$4 sm:$0xff]   ;;  %v2790_v48 = vld [vmem:[%s3432_s2 + $0x6c] ss:$16 sps:$4 sm:$0xff]   ;;  %2625 = vmatprep.subr.msk.bf16.mxu1 %vm3175_vm6, %v2787_v47 }
 0xfa2   :  { %2602 = vmatpush3.bf16.msra.mxu0 %v2599_v17  ;;  %2628 = vmatpush3.bf16.xpose.msk.msra.mxu1 %vm3175_vm6, %v2787_v47 }
 0xfa3   :  { %v2603_v14 = vpack.c.bf16 %v2764_v44, %v2763_v42  ;;  %v2864_v56 = vpop.eup %2863  ;;  %2631 = vmatprep.subr.msk.bf16.mxu1 %vm3175_vm6, %v2790_v48 }
 0xfa4   :  { %v2866_v54 = vpop.eup %2865  ;;  %v1387_v61 = vmul.f32 %v2864_v56, %v2852_v15 }
 0xfa5   :  { %2604 = vmatprep.subr.bf16.mxu0 %v2603_v14  ;;  %v1388_v63 = vmul.f32 %v2866_v54, %v3307_v8 }
 0xfa6   :  { %2606 = vmatpush3.bf16.msra.mxu0 %v2603_v14 }
 0xfa7   :  { %v2868_v62 = vpop.eup %2867  ;;  %2608 = vmatprep.subr.bf16.mxu0 %v2783_v1 }
 0xfa8   :  { %v2870_v0 = vpop.eup %2869  ;;  %v1389_v55 = vmul.f32 %v2868_v62, %v2854_v20 }
 0xfa9   :  { %2428 = vmatmul.mubr.msk.f32.vlgmr.msra.gmra.mrb[16].mxu0 %vm369_vm3, %v1384_v9  ;;  %v1390_v2 = vmul.f32 %v2870_v0, %v3312_v36  ;;  %v2788_v9 = vld [vmem:[%s3432_s2 + $0x68] ss:$16 sps:$4 sm:$0xff]  }
 0xfaa   :  { %2430 = vmatprep.mubr.msk.f32.mxu0 %vm369_vm3, %v1385_v53  ;;  %2610 = vmatpush3.bf16.msra.mxu0 %v2783_v1 }
 0xfab   :  { %2612 = vmatprep.subr.bf16.mxu0 %v2784_v3  ;;  %2634 = vmatpush3.bf16.xpose.msk.msra.mxu1 %vm3175_vm6, %v2790_v48 }
 0xfad   :  { %2431 = vmatmul.mubr.msk.f32.gmra.mrb[18].mxu0 %vm369_vm3, %v1386_v58 }
 0xfae   :  { %2433 = vmatprep.mubr.msk.f32.mxu0 %vm369_vm3, %v1387_v61  ;;  %2614 = vmatpush3.bf16.msra.mxu0 %v2784_v3 }
 0xfb1   :  { %2434 = vmatmul.mubr.msk.f32.gmra.mrb[20].mxu0 %vm369_vm3, %v1388_v63  ;;  %v1690_v63 = vrot.slane %v3228_v50, %v3157_v29 }
 0xfb2   :  { %2436 = vmatprep.mubr.msk.f32.mxu0 %vm369_vm3, %v1389_v55 }
 0xfb5   :  { %2437 = vmatmul.mubr.msk.f32.gmra.mrb[22].mxu0 %vm369_vm3, %v1390_v2  ;;  %v1696_v2 = vrot.slane %v3228_v50, %v764_v30 }
0x107c   :  { %v2429_v4 = vpop.f32.mrb[16].mxu0 }
0x107d   :  { %v1505_v37 = vpop.f32.mrb[17].mxu0 }
0x1080   :  { %v2432_v46 = vpop.f32.mrb[18].mxu0 }
0x1081   :  { %1548 = vrot.lane.b32.xlu1 %v2432_v46, %s2893_s27  ;;  %v1515_v6 = vpop.f32.mrb[19].mxu0 }
0x1082   :  { %1546 = vrot.lane.b32.xlu0 %v1515_v6, %s2893_s27  ;;  %v1702_v6 = vrot.slane %v3228_v50, %v3188_v52 }
0x1084   :  { %v2435_v8 = vpop.f32.mrb[20].mxu0 }
0x1085   :  { %1556 = vrot.lane.b32.xlu1 %v2435_v8, %s2894_s28  ;;  %v1525_v7 = vpop.f32.mrb[21].mxu0 }
0x1086   :  { %1554 = vrot.lane.b32.xlu0 %v1525_v7, %s2894_s28 }
0x1088   :  { %v2438_v43 = vpop.f32.mrb[22].mxu0 }
0x1089   :  { %1564 = vrot.lane.b32.xlu1 %v2438_v43, %s2895_s8  ;;  %v1535_v10 = vpop.f32.mrb[23].mxu0 }
0x108a   :  { %1562 = vrot.lane.b32.xlu0 %v1535_v10, %s2895_s8 }
0x10f3   :  { %v1549_v24 = vpop.permute.xlu1 %1548 }
0x10f4   :  { %v1547_v11 = vpop.permute.xlu0 %1546  ;;  %v1569_v18 = vsel %vm215_vm1, %v2429_v4, %v1549_v24 }
0x10f5   :  { %v1568_v34 = vsel %vm215_vm1, %v1505_v37, %v1547_v11 }
0x10f7   :  { %v1557_v16 = vpop.permute.xlu1 %1556 }
0x10f8   :  { %v1555_v36 = vpop.permute.xlu0 %1554  ;;  %v1571_v23 = vsel %vm637_vm4, %v1569_v18, %v1557_v16 }
0x10f9   :  { %v1570_v19 = vsel %vm637_vm4, %v1568_v34, %v1555_v36 }
0x10fb   :  { %v1565_v15 = vpop.permute.xlu1 %1564 }
0x10fc   :  { %v1563_v20 = vpop.permute.xlu0 %1562  ;;  %v1573_v25 = vsel %vm640_vm5, %v1571_v23, %v1565_v15 }
0x10fd   :  { %v1572_v27 = vsel %vm640_vm5, %v1570_v19, %v1563_v20 }
0x10fe   :  { %2447 = vmatprep.mubr.msk.f32.mxu0 %vm35_vm0, %v1572_v27 }
0x10ff   :  { %2448 = vmatmul.mubr.msk.f32.vlgmr.msra.gmra.mrb[24].mxu0 %vm35_vm0, %v1573_v25 }
0x11d2   :  { %v2449_v28 = vpop.f32.mrb[24].mxu0 }
0x11d3   :  { %v1656_v39 = vadd.f32 %v2449_v28, %v1577_v35  ;;  %v1650_v31 = vpop.f32.mrb[25].mxu0 }
0x11d4   :  { %v1651_v21 = vadd.f32 %v1650_v31, %v1577_v35 }
0x11d5   :  { %v1660_v32 = vadd.f32 %v1656_v39, %v3219_v5 }
0x11d6   :  { %v1659_v38 = vadd.f32 %v1651_v21, %v3217_v57  ;;  %v2785_v57 = vld [vmem:[%s3432_s2 + $0x48] ss:$16 sps:$4 sm:$0xff]  }
0x11d7   :  { %v1664_v49 = vsel %vm35_vm0, %v1660_v32, 0.0  ;;  %2616 = vmatprep.subr.bf16.mxu0 %v2785_v57 }
0x11d8   :  { %1665 = vadd.xlane.f32.xlu1 %v1664_v49  ;;  %v1661_v40 = vsel %vm35_vm0, %v1659_v38, 0.0  ;;  %2618 = vmatpush3.bf16.msra.mxu0 %v2785_v57 }
0x11d9   :  { %1662 = vadd.xlane.f32.xlu0 %v1661_v40  ;;  %2620 = vmatprep.subr.bf16.mxu0 %v2788_v9 }
0x11dc   :  { %2622 = vmatpush3.bf16.msra.mxu0 %v2788_v9 }
0x1265   :  { %v1666_v12 = vpop.xlane.xlu1 %1665 }
0x1266   :  { %v1668_v33 = vmul.f32 0.03125, %v1666_v12  ;;  %v1663_v17 = vpop.xlane.xlu0 %1662 }
0x1267   :  { %v1667_v41 = vmul.f32 0.03125, %v1663_v17 }
0x1268   :  { %v1670_v44 = vsub.f32 %v1660_v32, %v1668_v33  ;;  %v1805_v32 = vrot.slane %v3228_v50, %v3195_v13 }
0x1269   :  { %v1669_v26 = vsub.f32 %v1659_v38, %v1667_v41 }
0x126a   :  { %v1672_v45 = vmul.f32 %v1670_v44, %v1670_v44 }
0x126b   :  { %v1671_v42 = vmul.f32 %v1669_v26, %v1669_v26 }
0x126c   :  { %v1676_v5 = vsel %vm35_vm0, %v1672_v45, 0.0 }
0x126d   :  { %v1673_v14 = vsel %vm35_vm0, %v1671_v42, 0.0 }
0x126e   :  { %1674 = vadd.xlane.f32.xlu0 %v1673_v14 }
0x1272   :  { %1677 = vadd.xlane.f32.xlu0 %v1676_v5 }
0x12fb   :  { %v1675_v53 = vpop.xlane.xlu0 %1674 }
0x12fc   :  { %v1679_v56 = vmul.f32 0.03125, %v1675_v53 }
0x12fe   :  { %v1681_v58 = vadd.f32 1e-05, %v1679_v56  ;;  %v2887_v56 = vld [vmem:[%s3433_s4] sm:$0xff] }
0x12ff   :  { %v1678_v54 = vpop.xlane.xlu0 %1677 }
0x1300   :  { %2871 = vrsqrt.f32 %v1681_v58  ;;  %v1680_v61 = vmul.f32 0.03125, %v1678_v54  ;;  %v1954_v58 = vrot.slane %v2887_v56, 2  ;;  %v31_v54 = vld [vmem:[%s3433_s4 + $0x8] sm:$0xff] }
0x1302   :  { %v1682_v62 = vadd.f32 1e-05, %v1680_v61  ;;  %v32_v61 = vld [vmem:[%s3433_s4 + $0x10] sm:$0xff] }
0x1304   :  { %2873 = vrsqrt.f32 %v1682_v62  ;;  %v1955_v62 = vrot.slane %v31_v54, 2 }
0x130a   :  { %v2872_v0 = vpop.eup %2871 }
0x130b   :  { %v1685_v55 = vmul.f32 %v2872_v0, %v1669_v26  ;;  %v1956_v0 = vsel %vm1953_vm7, %v1954_v58, %v1955_v62 }
0x130d   :  { %v1691_v1 = vmul.f32 %v1690_v63, %v1685_v55 }
0x130e   :  { %v2874_v51 = vpop.eup %2873 }
0x130f   :  { %v1686_v3 = vmul.f32 %v2874_v51, %v1670_v44  ;;  %v1697_v4 = vadd.f32 %v1696_v2, %v1691_v1  ;;  %v33_v1 = vld [vmem:[%s3433_s4 + $0x18] sm:$0xff]  ;;  %v34_v51 = vld [vmem:[%s3433_s4 + $0x20] sm:$0x1f] }
0x1311   :  { %v1692_v37 = vmul.f32 %v1690_v63, %v1686_v3  ;;  %2458 = vmatprep.mubr.msk.f32.mxu0 %vm35_vm0, %v1697_v4  ;;  %v1957_v63 = vrot.slane %v32_v61, 2  ;;  %v2896_v3 = vmov 0.0|0.0  }
0x1312   :  { %2635 = vmatprep.subr.bf16.mxu0 %v2896_v3 }
0x1313   :  { %v1698_v46 = vadd.f32 %v1696_v2, %v1692_v37  ;;  %v1958_v55 = vsel %vm1953_vm7, %v1955_v62, %v1957_v63  ;;  %v1961_v37 = vrot.slane %v34_v51, 2 }
0x1314   :  { %v2636_v2 = vpack.c.bf16 %v1958_v55, %v1956_v0 }
0x1315   :  { %2459 = vmatmul.mubr.msk.f32.vlgmr.msra.gmra.mrb[26].mxu0 %vm35_vm0, %v1698_v46 }
0x1316   :  { %2637 = vmatpush3.bf16.msra.mxu0 %v2636_v2 }
0x1317   :  { %2638 = vmatprep.subr.bf16.mxu0 %v2896_v3 }
0x13e8   :  { %v2460_v8 = vpop.f32.mrb[26].mxu0 }
0x13e9   :  { %v1781_v7 = vadd.f32 %v2460_v8, %v1702_v6  ;;  %v1775_v43 = vpop.f32.mrb[27].mxu0 }
0x13ea   :  { %v1776_v10 = vadd.f32 %v1775_v43, %v1702_v6 }
0x13eb   :  { %v1787_v24 = vmul.f32 0.044715, %v1781_v7  ;;  %v1785_v39 = vmul.f32 0.5, %v1781_v7 }
0x13ec   :  { %v1786_v11 = vmul.f32 0.044715, %v1776_v10  ;;  %v1784_v35 = vmul.f32 0.5, %v1776_v10 }
0x13ed   :  { %v1789_v30 = vmul.f32 %v1787_v24, %v1781_v7 }
0x13ee   :  { %v1788_v16 = vmul.f32 %v1786_v11, %v1776_v10 }
0x13ef   :  { %v1791_v36 = vmul.f32 %v1789_v30, %v1781_v7 }
0x13f0   :  { %v1790_v34 = vmul.f32 %v1788_v16, %v1776_v10 }
0x13f1   :  { %v1793_v15 = vadd.f32 %v1791_v36, %v1781_v7  ;;  %v1930_v36 = vrot.slane %v3228_v50, %v998_v59 }
0x13f2   :  { %v1792_v18 = vadd.f32 %v1790_v34, %v1776_v10 }
0x13f3   :  { %v1795_v19 = vmul.f32 0.7978846, %v1793_v15 }
0x13f4   :  { %v1794_v20 = vmul.f32 0.7978846, %v1792_v18 }
0x13f5   :  { %2875 = vtanh.f32 %v1795_v19  ;;  %v1936_v19 = vrot.slane %v3228_v50, %v1004_v60 }
0x13f6   :  { %2877 = vtanh.f32 %v1794_v20 }
0x13ff   :  { %v2876_v23 = vpop.eup %2875 }
0x1400   :  { %v2878_v27 = vpop.eup %2877  ;;  %v1799_v25 = vadd.f32 1.0, %v2876_v23 }
0x1401   :  { %v1798_v28 = vadd.f32 1.0, %v2878_v27 }
0x1402   :  { %v1801_v21 = vmul.f32 %v1799_v25, %v1785_v39 }
0x1403   :  { %v1800_v31 = vmul.f32 %v1798_v28, %v1784_v35 }
0x1405   :  { %2469 = vmatprep.mubr.msk.f32.mxu1 %vm369_vm3, %v1800_v31  ;;  %v1947_v31 = vrot.slane %v34_v51, %v3188_v52 }
0x1406   :  { %2470 = vmatmul.mubr.msk.f32.vlgmr.msra.gmra.mrb[18].mxu1 %vm369_vm3, %v1801_v21 }
0x14d9   :  { %v2471_v38 = vpop.f32.mrb[18].mxu1 }
0x14da   :  { %v1896_v49 = vadd.f32 %v2471_v38, %v1805_v32  ;;  %v1890_v40 = vpop.f32.mrb[19].mxu1  ;;  %v2044_v38 = vrot.slane %v34_v51, %v3195_v13 }
0x14db   :  { %v1891_v12 = vadd.f32 %v1890_v40, %v1805_v32  ;;  %v2053_v40 = vrot.slane %v34_v51, %v3157_v29 }
0x14dc   :  { %v1900_v33 = vadd.f32 %v1896_v49, %v1698_v46  ;;  %v2898_v46 = vmov 0.0   ;;  %v2899_v49 = vmov 0  }
0x14dd   :  { %v1899_v17 = vadd.f32 %v1891_v12, %v1697_v4  ;;  %v1959_v4 = vrot.slane %v33_v1, 2  ;;  %2480 = vmatprep.mubr.msk.f32.mxu0 %vm2897_vm8, %v2898_v46  ;;  %2765 = vset.pattern.permute.xlu1 %v2899_v49 }
0x14de   :  { %v1904_v41 = vsel %vm35_vm0, %v1900_v33, 0.0  ;;  %2766 = vset.pattern.permute.xlu0 %v2899_v49 }
0x14df   :  { %1905 = vadd.xlane.f32.xlu0 %v1904_v41  ;;  %v1901_v44 = vsel %vm35_vm0, %v1899_v17, 0.0  ;;  %v1960_v6 = vsel %vm1953_vm7, %v1957_v63, %v1959_v4  ;;  %v1962_v8 = vsel %vm1953_vm7, %v1959_v4, %v1961_v37 }
0x14e0   :  { %1902 = vadd.xlane.f32.xlu1 %v1901_v44  ;;  %v2639_v7 = vpack.c.bf16 %v1962_v8, %v1960_v6 }
0x14e2   :  { %2640 = vmatpush3.bf16.msra.mxu0 %v2639_v7 }
0x156c   :  { %v1906_v26 = vpop.xlane.xlu0 %1905 }
0x156d   :  { %v1908_v42 = vmul.f32 0.03125, %v1906_v26  ;;  %v1903_v14 = vpop.xlane.xlu1 %1902 }
0x156e   :  { %v1907_v45 = vmul.f32 0.03125, %v1903_v14 }
0x156f   :  { %v1910_v5 = vsub.f32 %v1900_v33, %v1908_v42 }
0x1570   :  { %v1909_v57 = vsub.f32 %v1899_v17, %v1907_v45 }
0x1571   :  { %v1912_v47 = vmul.f32 %v1910_v5, %v1910_v5 }
0x1572   :  { %v1911_v9 = vmul.f32 %v1909_v57, %v1909_v57 }
0x1573   :  { %v1916_v48 = vsel %vm35_vm0, %v1912_v47, 0.0 }
0x1574   :  { %1917 = vadd.xlane.f32.xlu0 %v1916_v48  ;;  %v1913_v53 = vsel %vm35_vm0, %v1911_v9, 0.0 }
0x1575   :  { %1914 = vadd.xlane.f32.xlu1 %v1913_v53 }
0x1601   :  { %v1918_v43 = vpop.xlane.xlu0 %1917 }
0x1602   :  { %v1920_v10 = vmul.f32 0.03125, %v1918_v43  ;;  %v1915_v24 = vpop.xlane.xlu1 %1914 }
0x1603   :  { %v1919_v11 = vmul.f32 0.03125, %v1915_v24 }
0x1604   :  { %v1922_v30 = vadd.f32 1e-05, %v1920_v10 }
0x1605   :  { %v1921_v16 = vadd.f32 1e-05, %v1919_v11 }
0x1606   :  { %2879 = vrsqrt.f32 %v1922_v30 }
0x1607   :  { %2881 = vrsqrt.f32 %v1921_v16 }
0x1610   :  { %v2880_v34 = vpop.eup %2879 }
0x1611   :  { %v2882_v15 = vpop.eup %2881  ;;  %v1926_v18 = vmul.f32 %v2880_v34, %v1910_v5 }
0x1612   :  { %v1925_v20 = vmul.f32 %v2882_v15, %v1909_v57 }
0x1613   :  { %v1932_v23 = vmul.f32 %v1930_v36, %v1926_v18 }
0x1614   :  { %v1931_v27 = vmul.f32 %v1930_v36, %v1925_v20 }
0x1615   :  { %v1938_v25 = vadd.f32 %v1936_v19, %v1932_v23 }
0x1616   :  { %v1937_v35 = vadd.f32 %v1936_v19, %v1931_v27 }
0x1617   :  { %v1940_v28 = vrot.slane %v1938_v25, 7 }
0x1619   :  { %v1943_v39 = vsel %vm1942_vm9, %v1937_v35, %v1940_v28 }
0x161a   :  { %2481 = vmatmul.mubr.msk.f32.vlgmr.msra.gmra.mrb[28].mxu0 %vm35_vm0, %v1943_v39 }
0x16ed   :  { %v2036_v59 = vpop.f32.mrb[28].mxu0 }
0x16ee   :  { %v2037_v21 = vadd.f32 %v2036_v59, %v1947_v31  ;;  %v2482_v32 = vpop.f32.mrb[29].mxu0 }
0x16f0   :  { %v2040_v22 = vmax.f32 %v2037_v21, 0.0 }
0x16f2   :  { %v2045_v60 = vmul.f32 %v2044_v38, %v2040_v22 }
0x16f4   :  { %v2047_v50 = vsel %vm2046_vm10, %v2045_v60, 0.0 }
0x16f5   :  { %2048 = vadd.xlane.f32.xlu0 %v2047_v50 }
0x1782   :  { %v2049_v12 = vpop.xlane.xlu0 %2048 }
0x1783   :  { %v2054_v33 = vadd.f32 %v2053_v40, %v2049_v12 }
0x1785   :  { %v2055_v17 = vsub.f32 0.0, %v2054_v33 }
0x1787   :  { %v2056_v41 = vmul.f32 1.442695, %v2055_v17 }
0x1789   :  { %2883 = vpow2.f32 %v2056_v41 }
0x1793   :  { %v2884_v52 = vpop.eup %2883 }
0x1794   :  { %v2058_v44 = vadd.f32 1.0, %v2884_v52 }
0x1796   :  { %2885 = vrcp.f32 %v2058_v44 }
0x17a0   :  { %v2886_v13 = vpop.eup %2885 }
0x17a1   :  { %v2062_v26 = vsel %vm2061_vm11, %v2886_v13, 0.0 }
0x17a2   :  { %2065 = vperm.xlu1 %2765, %v2062_v26  }
0x1821   :  { %v2066_v42 = vpop.permute.xlu1 %2065 }
0x1822   :  { %2068 = vst [vmem:[%s3436_s5] sm:$0xff] %v2066_v42 }

</bundles_post_ra>
